<compile_context>
chip_gen: v7x
topology: tpu7x:2x2x1
jax: 0.10.0
libtpu: 0.0.40
codegen_flags: <defaults>
</compile_context>

<pallas_src>
import functools

import jax
import jax.numpy as jnp
from jax.experimental import pallas as pl
from jax.experimental.pallas import tpu as pltpu

_LANE = 128


def _round_up(x, m):
    return ((x + m - 1) // m) * m


def _tile_rows(n, c, cls_itemsize, reg_itemsize, vmem_budget_bytes,
               max_rows=None):
    """Rows per tile from a VMEM budget (lane-padded, double-buffered inputs)."""
    cls_row = _round_up(c, _LANE) * cls_itemsize     # (tn, C) tile
    tgt_row = _LANE * 4                              # (tn, 1) int32 tile
    reg_row = _LANE * reg_itemsize                   # (tn, 4) tiles (x2 arrays)
    acc_row = 3 * _LANE * 4                          # three (tn, 1) f32 accums
    per_row = 2 * (cls_row + tgt_row + 2 * reg_row) + acc_row
    cap = max(8, vmem_budget_bytes // per_row)
    if max_rows is not None:
        cap = min(cap, max(8, int(max_rows)))
    if n <= cap:
        return n                                     # single tile, full extent
    return max(8, (cap // 8) * 8)                    # sublane-aligned tile


def _fast_rcnn_loss_kernel(cls_ref, tgt_ref, preg_ref, treg_ref,
                           cls_out_ref, reg_out_ref,
                           acc_ce_ref, acc_reg_ref, acc_cnt_ref,
                           *, beta, n_rois):
    step = pl.program_id(0)

    @pl.when(step == 0)
    def _init():
        acc_ce_ref[...] = jnp.zeros_like(acc_ce_ref)
        acc_reg_ref[...] = jnp.zeros_like(acc_reg_ref)
        acc_cnt_ref[...] = jnp.zeros_like(acc_cnt_ref)

    logits = cls_ref[...].astype(jnp.float32)                  # (tn, C)
    tn, c = logits.shape
    tgt = tgt_ref[...]                                         # (tn, 1) int32

    # Ragged tail handled in-kernel: rows past n_rois are masked out (covers
    # both the grid overhang and any garbage in the edge-block DMA buffer).
    rows = jax.lax.broadcasted_iota(jnp.int32, (tn, 1), 0) + step * tn
    row_valid = rows < n_rois                                  # (tn, 1) bool
    logits = jnp.where(row_valid, logits, 0.0)

    # ---- cross entropy: class reduction over the lane axis (XLU) ----------
    m = jnp.max(logits, axis=-1, keepdims=True)                # (tn, 1)
    z = logits - m
    lse = jnp.log(jnp.sum(jnp.exp(z), axis=-1, keepdims=True))  # (tn, 1)
    class_ids = jax.lax.broadcasted_iota(jnp.int32, (tn, c), 1)
    picked_num = jnp.sum(jnp.where(class_ids == tgt, z, 0.0),
                         axis=-1, keepdims=True)               # (tn, 1)
    valid = jnp.logical_and(row_valid, tgt >= 0).astype(jnp.float32)
    picked = picked_num - lse * valid                          # (tn, 1)

    # ---- smooth-L1 on foreground RoIs --------------------------------------
    x = jnp.abs(preg_ref[...].astype(jnp.float32) -
                treg_ref[...].astype(jnp.float32))             # (tn, 4)
    x = jnp.where(row_valid, x, 0.0)
    sl1 = jnp.where(x >= beta, x - 0.5 * beta, x * x * (0.5 / beta))
    fg = jnp.logical_and(row_valid, tgt > 0).astype(jnp.float32)  # (tn, 1)
    reg_row = jnp.sum(sl1 * fg, axis=-1, keepdims=True)        # (tn, 1)

    # ---- per-row VALU accumulation in VMEM (reduce only at finalize) ------
    acc_ce_ref[...] = acc_ce_ref[...] + picked
    acc_reg_ref[...] = acc_reg_ref[...] + reg_row
    acc_cnt_ref[...] = acc_cnt_ref[...] + valid

    @pl.when(step == pl.num_programs(0) - 1)
    def _finalize():
        cls_out_ref[0, 0] = jnp.sum(acc_ce_ref[...]) * (-1.0 / float(n_rois))
        reg_out_ref[0, 0] = jnp.sum(acc_reg_ref[...]) / jnp.sum(acc_cnt_ref[...])


def fast_rcnn_loss(pred_cls, pred_reg, target_cls, target_reg, beta=1.0,
                   max_rows_per_tile=None,
                   vmem_budget_bytes=24 * 1024 * 1024):
    """pred_cls: (1, N, C), pred_reg: (1, N, 4), target_cls: (N,), target_reg: (N, 4)."""
    pred_cls2d = jnp.squeeze(pred_cls, axis=0)                 # (N, C), metadata only
    pred_reg2d = jnp.squeeze(pred_reg, axis=0)                 # (N, 4), metadata only
    n, c = pred_cls2d.shape
    tgt_col = target_cls.astype(jnp.int32).reshape(n, 1)       # tiny (N, 1)

    reg_itemsize = max(jnp.dtype(pred_reg2d.dtype).itemsize,
                       jnp.dtype(target_reg.dtype).itemsize)
    tn = _tile_rows(n, c, jnp.dtype(pred_cls2d.dtype).itemsize,
                    reg_itemsize, vmem_budget_bytes, max_rows_per_tile)
    grid = pl.cdiv(n, tn)

    kernel = functools.partial(_fast_rcnn_loss_kernel,
                               beta=float(beta), n_rois=n)
    cls_loss, reg_loss = pl.pallas_call(
        kernel,
        out_shape=(
            jax.ShapeDtypeStruct((1, 1), jnp.float32),
            jax.ShapeDtypeStruct((1, 1), jnp.float32),
        ),
        grid_spec=pltpu.PrefetchScalarGridSpec(
            num_scalar_prefetch=0,
            grid=(grid,),
            in_specs=[
                pl.BlockSpec((tn, c), lambda i: (i, 0)),   # logits (N, C)
                pl.BlockSpec((tn, 1), lambda i: (i, 0)),   # target_cls (N, 1)
                pl.BlockSpec((tn, 4), lambda i: (i, 0)),   # pred_reg (N, 4)
                pl.BlockSpec((tn, 4), lambda i: (i, 0)),   # target_reg (N, 4)
            ],
            out_specs=(
                pl.BlockSpec(memory_space=pltpu.MemorySpace.SMEM),
                pl.BlockSpec(memory_space=pltpu.MemorySpace.SMEM),
            ),
            scratch_shapes=[
                pltpu.VMEM((tn, 1), jnp.float32),   # sum of picked log-probs
                pltpu.VMEM((tn, 1), jnp.float32),   # sum of fg smooth-L1
                pltpu.VMEM((tn, 1), jnp.float32),   # count(target_cls >= 0)
            ]),
        compiler_params=pltpu.CompilerParams(
            dimension_semantics=("arbitrary",),
            vmem_limit_bytes=32 * 1024 * 1024),
    )(pred_cls2d, tgt_col, pred_reg2d, target_reg)
    return cls_loss[0, 0], reg_loss[0, 0]


def _reference(pred_cls, pred_reg, target_cls, target_reg, beta=1.0):
    logits = jnp.squeeze(pred_cls, 0)
    log_probs = jax.nn.log_softmax(logits, axis=-1)
    n = logits.shape[0]
    cls_loss = -jnp.mean(log_probs[jnp.arange(n), target_cls])
    x = jnp.abs(jnp.squeeze(pred_reg, 0) - target_reg)
    sl1 = jnp.where(x >= beta, x - 0.5 * beta, 0.5 * x * x / beta)
    fg = (target_cls > 0).astype(jnp.float32)[:, None]
    reg_loss = jnp.sum(sl1 * fg) / jnp.sum((target_cls >= 0).astype(jnp.float32))
    return cls_loss, reg_loss


if __name__ == "__main__":
    key = jax.random.PRNGKey(0)
    k1, k2, k3, k4 = jax.random.split(key, 4)
    N, C = 200, 16  # N RoIs (deliberately ragged), C classes (class 0 = background)
    pred_cls = jax.random.normal(k1, (1, N, C), jnp.float32)
    pred_reg = jax.random.normal(k2, (1, N, 4), jnp.float32)
    target_cls = jax.random.randint(k3, (N,), 0, C, jnp.int32)
    target_reg = jax.random.normal(k4, (N, 4), jnp.float32)

    ref_cls, ref_reg = _reference(pred_cls, pred_reg, target_cls, target_reg)

    # Single-tile path (grid collapses to 1 step).
    cls_loss, reg_loss = fast_rcnn_loss(pred_cls, pred_reg, target_cls, target_reg)
    jax.block_until_ready((cls_loss, reg_loss))
    assert jnp.allclose(cls_loss, ref_cls, atol=1e-5, rtol=1e-5), (cls_loss, ref_cls)
    assert jnp.allclose(reg_loss, ref_reg, atol=1e-5, rtol=1e-5), (reg_loss, ref_reg)

    # Multi-tile path (forces the accumulator + ragged edge-block mask).
    cls_loss_t, reg_loss_t = fast_rcnn_loss(pred_cls, pred_reg, target_cls,
                                            target_reg, max_rows_per_tile=64)
    jax.block_until_ready((cls_loss_t, reg_loss_t))
    assert jnp.allclose(cls_loss_t, ref_cls, atol=1e-5, rtol=1e-5), (cls_loss_t, ref_cls)
    assert jnp.allclose(reg_loss_t, ref_reg, atol=1e-5, rtol=1e-5), (reg_loss_t, ref_reg)

    print("KERNEL_OK")
</pallas_src>

<mosaic_0001>
module attributes {stable_mosaic.version = 11 : i64} {
  func.func @_fast_rcnn_loss_kernel(%arg0: i32, %arg1: memref<200x16xf32, #tpu.memory_space<vmem>>, %arg2: memref<200x1xi32, #tpu.memory_space<vmem>>, %arg3: memref<200x4xf32, #tpu.memory_space<vmem>>, %arg4: memref<200x4xf32, #tpu.memory_space<vmem>>, %arg5: memref<1x1xf32, #tpu.memory_space<smem>>, %arg6: memref<1x1xf32, #tpu.memory_space<smem>>, %arg7: memref<200x1xf32, #tpu.memory_space<vmem>>, %arg8: memref<200x1xf32, #tpu.memory_space<vmem>>, %arg9: memref<200x1xf32, #tpu.memory_space<vmem>>) attributes {dimension_semantics = [#tpu.dimension_semantics<arbitrary>], iteration_bounds = array<i64: 1>, scalar_prefetch = 0 : i64, scratch_operands = 3 : i64, tpu.core_type = #tpu.core_type<tc>, window_params = [{transform_indices = @transform_0, window_bounds = array<i64: 200, 16>}, {transform_indices = @transform_1, window_bounds = array<i64: 200, 1>}, {transform_indices = @transform_2, window_bounds = array<i64: 200, 4>}, {transform_indices = @transform_3, window_bounds = array<i64: 200, 4>}, {transform_indices = @transform_4, window_bounds = array<i64: 1, 1>}, {transform_indices = @transform_5, window_bounds = array<i64: 1, 1>}]} {
    %c0_i32 = arith.constant 0 : i32
    %0 = arith.cmpi eq, %arg0, %c0_i32 : i32
    %1 = arith.extui %0 : i1 to i32
    %c0_i32_0 = arith.constant 0 : i32
    %2 = arith.cmpi ne, %1, %c0_i32_0 : i32
    scf.if %2 {
      %cst_34 = arith.constant 0.000000e+00 : f32
      %74 = vector.broadcast %cst_34 : f32 to vector<200x1xf32>
      %c0_35 = arith.constant 0 : index
      %c0_36 = arith.constant 0 : index
      %75 = vector.load %arg7[%c0_35, %c0_36] : memref<200x1xf32, #tpu.memory_space<vmem>>, vector<200x1xf32>
      tpu.vector_store %arg7[%c0_35, %c0_36], %74 {strides = array<i32>} : memref<200x1xf32, #tpu.memory_space<vmem>>, vector<200x1xf32>,
      %cst_37 = arith.constant 0.000000e+00 : f32
      %76 = vector.broadcast %cst_37 : f32 to vector<200x1xf32>
      %c0_38 = arith.constant 0 : index
      %c0_39 = arith.constant 0 : index
      %77 = vector.load %arg8[%c0_38, %c0_39] : memref<200x1xf32, #tpu.memory_space<vmem>>, vector<200x1xf32>
      tpu.vector_store %arg8[%c0_38, %c0_39], %76 {strides = array<i32>} : memref<200x1xf32, #tpu.memory_space<vmem>>, vector<200x1xf32>,
      %cst_40 = arith.constant 0.000000e+00 : f32
      %78 = vector.broadcast %cst_40 : f32 to vector<200x1xf32>
      %c0_41 = arith.constant 0 : index
      %c0_42 = arith.constant 0 : index
      %79 = vector.load %arg9[%c0_41, %c0_42] : memref<200x1xf32, #tpu.memory_space<vmem>>, vector<200x1xf32>
      tpu.vector_store %arg9[%c0_41, %c0_42], %78 {strides = array<i32>} : memref<200x1xf32, #tpu.memory_space<vmem>>, vector<200x1xf32>,
    } else {
    }
    %c0 = arith.constant 0 : index
    %c0_1 = arith.constant 0 : index
    %3 = vector.load %arg1[%c0, %c0_1] : memref<200x16xf32, #tpu.memory_space<vmem>>, vector<200x16xf32>
    %c0_2 = arith.constant 0 : index
    %c0_3 = arith.constant 0 : index
    %4 = vector.load %arg2[%c0_2, %c0_3] : memref<200x1xi32, #tpu.memory_space<vmem>>, vector<200x1xi32>
    %5 = tpu.iota {dimensions = array<i32: 0>} : vector<200x1xi32>
    %c200_i32 = arith.constant 200 : i32
    %6 = arith.muli %arg0, %c200_i32 : i32
    %7 = vector.broadcast %6 : i32 to vector<200x1xi32>
    %8 = arith.addi %5, %7 : vector<200x1xi32>
    %c200_i32_4 = arith.constant 200 : i32
    %9 = vector.broadcast %c200_i32_4 : i32 to vector<200x1xi32>
    %10 = arith.cmpi slt, %8, %9 : vector<200x1xi32>
    %cst = arith.constant 0.000000e+00 : f32
    %11 = vector.shape_cast %10 : vector<200x1xi1> to vector<200x1xi1>
    %12 = vector.broadcast %11 : vector<200x1xi1> to vector<200x16xi1>
    %13 = vector.broadcast %cst : f32 to vector<200x16xf32>
    %14 = arith.select %12, %3, %13 : vector<200x16xi1>, vector<200x16xf32>
    %cst_5 = arith.constant dense<0xFF800000> : vector<200xf32>
    %15 = vector.multi_reduction <maximumf>, %14, %cst_5 [1] : vector<200x16xf32> to vector<200xf32>
    %16 = vector.shape_cast %15 : vector<200xf32> to vector<200x1xf32>
    %17 = vector.broadcast %16 : vector<200x1xf32> to vector<200x16xf32>
    %18 = arith.subf %14, %17 : vector<200x16xf32>
    %19 = math.exp %18 : vector<200x16xf32>
    %cst_6 = arith.constant dense<0.000000e+00> : vector<200xf32>
    %20 = vector.multi_reduction <add>, %19, %cst_6 [1] : vector<200x16xf32> to vector<200xf32>
    %21 = vector.shape_cast %20 : vector<200xf32> to vector<200x1xf32>
    %22 = math.log %21 : vector<200x1xf32>
    %23 = tpu.iota {dimensions = array<i32: 1>} : vector<200x16xi32>
    %24 = vector.broadcast %4 : vector<200x1xi32> to vector<200x16xi32>
    %25 = arith.cmpi eq, %23, %24 : vector<200x16xi32>
    %cst_7 = arith.constant 0.000000e+00 : f32
    %26 = vector.broadcast %cst_7 : f32 to vector<200x16xf32>
    %27 = arith.select %25, %18, %26 : vector<200x16xi1>, vector<200x16xf32>
    %cst_8 = arith.constant dense<0.000000e+00> : vector<200xf32>
    %28 = vector.multi_reduction <add>, %27, %cst_8 [1] : vector<200x16xf32> to vector<200xf32>
    %29 = vector.shape_cast %28 : vector<200xf32> to vector<200x1xf32>
    %c0_i32_9 = arith.constant 0 : i32
    %30 = vector.broadcast %c0_i32_9 : i32 to vector<200x1xi32>
    %31 = arith.cmpi sge, %4, %30 : vector<200x1xi32>
    %32 = arith.andi %10, %31 : vector<200x1xi1>
    %33 = arith.extui %32 : vector<200x1xi1> to vector<200x1xi32>
    %34 = arith.sitofp %33 : vector<200x1xi32> to vector<200x1xf32>
    %35 = arith.mulf %22, %34 : vector<200x1xf32>
    %36 = arith.subf %29, %35 : vector<200x1xf32>
    %c0_10 = arith.constant 0 : index
    %c0_11 = arith.constant 0 : index
    %37 = vector.load %arg3[%c0_10, %c0_11] : memref<200x4xf32, #tpu.memory_space<vmem>>, vector<200x4xf32>
    %c0_12 = arith.constant 0 : index
    %c0_13 = arith.constant 0 : index
    %38 = vector.load %arg4[%c0_12, %c0_13] : memref<200x4xf32, #tpu.memory_space<vmem>>, vector<200x4xf32>
    %39 = arith.subf %37, %38 : vector<200x4xf32>
    %40 = math.absf %39 : vector<200x4xf32>
    %cst_14 = arith.constant 0.000000e+00 : f32
    %41 = vector.shape_cast %10 : vector<200x1xi1> to vector<200x1xi1>
    %42 = vector.broadcast %41 : vector<200x1xi1> to vector<200x4xi1>
    %43 = vector.broadcast %cst_14 : f32 to vector<200x4xf32>
    %44 = arith.select %42, %40, %43 : vector<200x4xi1>, vector<200x4xf32>
    %cst_15 = arith.constant 1.000000e+00 : f32
    %45 = vector.broadcast %cst_15 : f32 to vector<200x4xf32>
    %46 = arith.cmpf oge, %44, %45 : vector<200x4xf32>
    %cst_16 = arith.constant 5.000000e-01 : f32
    %47 = vector.broadcast %cst_16 : f32 to vector<200x4xf32>
    %48 = arith.subf %44, %47 : vector<200x4xf32>
    %49 = arith.mulf %44, %44 : vector<200x4xf32>
    %cst_17 = arith.constant 5.000000e-01 : f32
    %50 = vector.broadcast %cst_17 : f32 to vector<200x4xf32>
    %51 = arith.mulf %49, %50 : vector<200x4xf32>
    %52 = arith.select %46, %48, %51 : vector<200x4xi1>, vector<200x4xf32>
    %c0_i32_18 = arith.constant 0 : i32
    %53 = vector.broadcast %c0_i32_18 : i32 to vector<200x1xi32>
    %54 = arith.cmpi sgt, %4, %53 : vector<200x1xi32>
    %55 = arith.andi %10, %54 : vector<200x1xi1>
    %56 = arith.extui %55 : vector<200x1xi1> to vector<200x1xi32>
    %57 = arith.sitofp %56 : vector<200x1xi32> to vector<200x1xf32>
    %58 = vector.broadcast %57 : vector<200x1xf32> to vector<200x4xf32>
    %59 = arith.mulf %52, %58 : vector<200x4xf32>
    %cst_19 = arith.constant dense<0.000000e+00> : vector<200xf32>
    %60 = vector.multi_reduction <add>, %59, %cst_19 [1] : vector<200x4xf32> to vector<200xf32>
    %61 = vector.shape_cast %60 : vector<200xf32> to vector<200x1xf32>
    %c0_20 = arith.constant 0 : index
    %c0_21 = arith.constant 0 : index
    %62 = vector.load %arg7[%c0_20, %c0_21] : memref<200x1xf32, #tpu.memory_space<vmem>>, vector<200x1xf32>
    %63 = arith.addf %62, %36 : vector<200x1xf32>
    %c0_22 = arith.constant 0 : index
    %c0_23 = arith.constant 0 : index
    %64 = vector.load %arg7[%c0_22, %c0_23] : memref<200x1xf32, #tpu.memory_space<vmem>>, vector<200x1xf32>
    tpu.vector_store %arg7[%c0_22, %c0_23], %63 {strides = array<i32>} : memref<200x1xf32, #tpu.memory_space<vmem>>, vector<200x1xf32>,
    %c0_24 = arith.constant 0 : index
    %c0_25 = arith.constant 0 : index
    %65 = vector.load %arg8[%c0_24, %c0_25] : memref<200x1xf32, #tpu.memory_space<vmem>>, vector<200x1xf32>
    %66 = arith.addf %65, %61 : vector<200x1xf32>
    %c0_26 = arith.constant 0 : index
    %c0_27 = arith.constant 0 : index
    %67 = vector.load %arg8[%c0_26, %c0_27] : memref<200x1xf32, #tpu.memory_space<vmem>>, vector<200x1xf32>
    tpu.vector_store %arg8[%c0_26, %c0_27], %66 {strides = array<i32>} : memref<200x1xf32, #tpu.memory_space<vmem>>, vector<200x1xf32>,
    %c0_28 = arith.constant 0 : index
    %c0_29 = arith.constant 0 : index
    %68 = vector.load %arg9[%c0_28, %c0_29] : memref<200x1xf32, #tpu.memory_space<vmem>>, vector<200x1xf32>
    %69 = arith.addf %68, %34 : vector<200x1xf32>
    %c0_30 = arith.constant 0 : index
    %c0_31 = arith.constant 0 : index
    %70 = vector.load %arg9[%c0_30, %c0_31] : memref<200x1xf32, #tpu.memory_space<vmem>>, vector<200x1xf32>
    tpu.vector_store %arg9[%c0_30, %c0_31], %69 {strides = array<i32>} : memref<200x1xf32, #tpu.memory_space<vmem>>, vector<200x1xf32>,
    %c0_i32_32 = arith.constant 0 : i32
    %71 = arith.cmpi eq, %arg0, %c0_i32_32 : i32
    %72 = arith.extui %71 : i1 to i32
    %c0_i32_33 = arith.constant 0 : i32
    %73 = arith.cmpi ne, %72, %c0_i32_33 : i32
    scf.if %73 {
      %c0_34 = arith.constant 0 : index
      %c0_35 = arith.constant 0 : index
      %74 = vector.load %arg7[%c0_34, %c0_35] : memref<200x1xf32, #tpu.memory_space<vmem>>, vector<200x1xf32>
      %75 = vector.shape_cast %74 : vector<200x1xf32> to vector<1x200x1xf32>
      %cst_36 = arith.constant dense<0.000000e+00> : vector<1xf32>
      %76 = vector.multi_reduction <add>, %75, %cst_36 [1, 2] : vector<1x200x1xf32> to vector<1xf32>
      %77 = vector.shape_cast %76 : vector<1xf32> to vector<1x1x1xf32>
      %78 = vector.extract %77[0, 0, 0] : f32 from vector<1x1x1xf32>
      %cst_37 = arith.constant -5.000000e-03 : f32
      %79 = arith.mulf %78, %cst_37 : f32
      %c0_38 = arith.constant 0 : index
      %c0_39 = arith.constant 0 : index
      %80 = memref.load %arg5[%c0_38, %c0_39] : memref<1x1xf32, #tpu.memory_space<smem>>
      memref.store %79, %arg5[%c0_38, %c0_39] : memref<1x1xf32, #tpu.memory_space<smem>>
      %c0_40 = arith.constant 0 : index
      %c0_41 = arith.constant 0 : index
      %81 = vector.load %arg8[%c0_40, %c0_41] : memref<200x1xf32, #tpu.memory_space<vmem>>, vector<200x1xf32>
      %82 = vector.shape_cast %81 : vector<200x1xf32> to vector<1x200x1xf32>
      %cst_42 = arith.constant dense<0.000000e+00> : vector<1xf32>
      %83 = vector.multi_reduction <add>, %82, %cst_42 [1, 2] : vector<1x200x1xf32> to vector<1xf32>
      %84 = vector.shape_cast %83 : vector<1xf32> to vector<1x1x1xf32>
      %85 = vector.extract %84[0, 0, 0] : f32 from vector<1x1x1xf32>
      %c0_43 = arith.constant 0 : index
      %c0_44 = arith.constant 0 : index
      %86 = vector.load %arg9[%c0_43, %c0_44] : memref<200x1xf32, #tpu.memory_space<vmem>>, vector<200x1xf32>
      %87 = vector.shape_cast %86 : vector<200x1xf32> to vector<1x200x1xf32>
      %cst_45 = arith.constant dense<0.000000e+00> : vector<1xf32>
      %88 = vector.multi_reduction <add>, %87, %cst_45 [1, 2] : vector<1x200x1xf32> to vector<1xf32>
      %89 = vector.shape_cast %88 : vector<1xf32> to vector<1x1x1xf32>
      %90 = vector.extract %89[0, 0, 0] : f32 from vector<1x1x1xf32>
      %91 = arith.divf %85, %90 : f32
      %c0_46 = arith.constant 0 : index
      %c0_47 = arith.constant 0 : index
      %92 = memref.load %arg6[%c0_46, %c0_47] : memref<1x1xf32, #tpu.memory_space<smem>>
      memref.store %91, %arg6[%c0_46, %c0_47] : memref<1x1xf32, #tpu.memory_space<smem>>
    } else {
    }
    return
  }
  func.func @transform_0(%arg0: i32) -> (i32, i32) {
    %c0_i32 = arith.constant 0 : i32
    %c0_i32_0 = arith.constant 0 : i32
    return %arg0, %c0_i32 : i32, i32
  }
  func.func @transform_1(%arg0: i32) -> (i32, i32) {
    %c0_i32 = arith.constant 0 : i32
    %c0_i32_0 = arith.constant 0 : i32
    return %arg0, %c0_i32 : i32, i32
  }
  func.func @transform_2(%arg0: i32) -> (i32, i32) {
    %c0_i32 = arith.constant 0 : i32
    %c0_i32_0 = arith.constant 0 : i32
    return %arg0, %c0_i32 : i32, i32
  }
  func.func @transform_3(%arg0: i32) -> (i32, i32) {
    %c0_i32 = arith.constant 0 : i32
    %c0_i32_0 = arith.constant 0 : i32
    return %arg0, %c0_i32 : i32, i32
  }
  func.func @transform_4(%arg0: i32) -> (i32, i32) {
    %c0_i32 = arith.constant 0 : i32
    %c0_i32_0 = arith.constant 0 : i32
    %c0_i32_1 = arith.constant 0 : i32
    return %c0_i32, %c0_i32_0 : i32, i32
  }
  func.func @transform_5(%arg0: i32) -> (i32, i32) {
    %c0_i32 = arith.constant 0 : i32
    %c0_i32_0 = arith.constant 0 : i32
    %c0_i32_1 = arith.constant 0 : i32
    return %c0_i32, %c0_i32_0 : i32, i32
  }
}

</mosaic_0001>

<bundles_post_ra>
// kernel: tpu_custom_call.1
= control target key start
LH: loop header
LB: loop body
LE: loop exit
PB: predicated region body
PF: predicated region fallthrough
CT: control target
= control target key end

     0   :  { %11 = vsyncpa [#allocation6], 0  ;;  %vm304_vm0 = vcmask 130048   ;;  %v2321_v6 = vmov 0   ;;  %s3964_s0 = inlined_call_operand.vmem [shape: f32[200,16], index: 0, kind: input, shape index: {}]   ;;  %s3965_s1 = inlined_call_operand.vmem [shape: s32[200,1], index: 1, kind: input, shape index: {}]   ;;  %s3966_s2 = inlined_call_operand.vmem [shape: f32[200,4], index: 2, kind: input, shape index: {}]   ;;  %s3967_s3 = inlined_call_operand.vmem [shape: f32[200,4], index: 3, kind: input, shape index: {}]   ;;  %s3968_s4 = inlined_call_operand.hbm [shape: f32[1,1], index: 4, kind: output, shape index: {0}]   ;;  %s3969_s5 = inlined_call_operand.hbm [shape: f32[1,1], index: 5, kind: output, shape index: {1}]  }
   0x1   :  { %v2358_v0 = vld [vmem:[%s3964_s0 + $0x10] sm:$0xff]  ;;  %v2363_v1 = vld [vmem:[%s3964_s0] sm:$0xff]  ;;  %v2368_v2 = vld [vmem:[%s3964_s0 + $0x18] sm:$0xff]  ;;  %2107 = vset.pattern.permute.xlu1 %v2321_v6  ;;  %2108 = vset.pattern.permute.xlu0 %v2321_v6 }
   0x2   :  { %v311_v3 = vsel %vm304_vm0, %v2358_v0, -inf  ;;  %v305_v4 = vsel %vm304_vm0, %v2363_v1, -inf  ;;  %v2377_v5 = vld [vmem:[%s3964_s0 + $0x8] sm:$0xff]  ;;  %v314_v7 = vsel %vm304_vm0, %v2368_v2, -inf  ;;  %v2391_v10 = vld [vmem:[%s3964_s0 + $0x20] sm:$0xff]  ;;  %v2400_v13 = vld [vmem:[%s3964_s0 + $0x38] sm:$0xff] }
   0x3   :  { %312 = vmax.xlane.f32.xlu1 %v311_v3  ;;  %306 = vmax.xlane.f32.xlu0 %v305_v4  ;;  %v308_v8 = vsel %vm304_vm0, %v2377_v5, -inf  ;;  %v2386_v9 = vld [vmem:[%s3964_s0 + $0x28] sm:$0xff]  ;;  %v317_v12 = vsel %vm304_vm0, %v2391_v10, -inf  ;;  %v2405_v14 = vld [vmem:[%s3964_s0 + $0x30] sm:$0xff]  ;;  %v326_v15 = vsel %vm304_vm0, %v2400_v13, -inf  ;;  %v2419_v18 = vld [vmem:[%s3964_s0 + $0x40] sm:$0xff] }
   0x4   :  { %v320_v11 = vsel %vm304_vm0, %v2386_v9, -inf  ;;  %v323_v16 = vsel %vm304_vm0, %v2405_v14, -inf  ;;  %v2414_v17 = vld [vmem:[%s3964_s0 + $0x48] sm:$0xff]  ;;  %v329_v20 = vsel %vm304_vm0, %v2419_v18, -inf  ;;  %v2428_v21 = vld [vmem:[%s3964_s0 + $0x58] sm:$0xff]  ;;  %v2433_v22 = vld [vmem:[%s3964_s0 + $0x50] sm:$0xff] }
   0x5   :  { %v332_v19 = vsel %vm304_vm0, %v2414_v17, -inf }
   0x7   :  { %315 = vmax.xlane.f32.xlu1 %v314_v7  ;;  %309 = vmax.xlane.f32.xlu0 %v308_v8 }
   0xb   :  { %321 = vmax.xlane.f32.xlu1 %v320_v11  ;;  %318 = vmax.xlane.f32.xlu0 %v317_v12 }
   0xf   :  { %327 = vmax.xlane.f32.xlu1 %v326_v15  ;;  %324 = vmax.xlane.f32.xlu0 %v323_v16 }
  0x10   :  { %12 = vsyncpa [#allocation8], 0  ;;  %v338_v23 = vsel %vm304_vm0, %v2428_v21, -inf  ;;  %v335_v24 = vsel %vm304_vm0, %v2433_v22, -inf  ;;  %v2442_v25 = vld [vmem:[%s3964_s0 + $0x68] sm:$0xff]  ;;  %v2447_v26 = vld [vmem:[%s3964_s0 + $0x60] sm:$0xff] }
  0x11   :  { %v344_v27 = vsel %vm304_vm0, %v2442_v25, -inf  ;;  %v341_v28 = vsel %vm304_vm0, %v2447_v26, -inf  ;;  %v2456_v29 = vld [vmem:[%s3964_s0 + $0x78] sm:$0xff]  ;;  %v2461_v30 = vld [vmem:[%s3964_s0 + $0x70] sm:$0xff]  ;;  %v118_v33 = vld [vmem:[%s3964_s0 + $0x88] sm:$0xff]  ;;  %v2322_v54 = vmov 0.0  }
  0x12   :  { %v350_v31 = vsel %vm304_vm0, %v2456_v29, -inf  ;;  %v347_v32 = vsel %vm304_vm0, %v2461_v30, -inf  ;;  %v2473_v34 = vld [vmem:[%s3964_s0 + $0x80] sm:$0xff]  ;;  %v356_v35 = vsel %vm304_vm0, %v118_v33, -inf  ;;  %v120_v37 = vld [vmem:[%s3964_s0 + $0x98] sm:$0xff]  ;;  %v2484_v38 = vld [vmem:[%s3964_s0 + $0x90] sm:$0xff] }
  0x13   :  { %333 = vmax.xlane.f32.xlu1 %v332_v19  ;;  %330 = vmax.xlane.f32.xlu0 %v329_v20  ;;  %v353_v36 = vsel %vm304_vm0, %v2473_v34, -inf  ;;  %v362_v39 = vsel %vm304_vm0, %v120_v37, -inf  ;;  %v359_v40 = vsel %vm304_vm0, %v2484_v38, -inf  ;;  %v122_v41 = vld [vmem:[%s3964_s0 + $0xa8] sm:$0xff]  ;;  %v121_v42 = vld [vmem:[%s3964_s0 + $0xa0] sm:$0xff]  ;;  %v124_v45 = vld [vmem:[%s3964_s0 + $0xb8] sm:$0xff] }
  0x14   :  { %v368_v43 = vsel %vm304_vm0, %v122_v41, -inf  ;;  %v365_v44 = vsel %vm304_vm0, %v121_v42, -inf  ;;  %v123_v46 = vld [vmem:[%s3964_s0 + $0xb0] sm:$0xff]  ;;  %v374_v47 = vsel %vm304_vm0, %v124_v45, -inf  ;;  %v125_v49 = vld [vmem:[%s3964_s0 + $0xc0] sm:$0xff]  ;;  %v2512_v51 = vld [vmem:[%s3965_s1 + $0x8] sm:$0xff] }
  0x15   :  { %v371_v48 = vsel %vm304_vm0, %v123_v46, -inf  ;;  %v377_v50 = vsel %vm304_vm0, %v125_v49, -inf  ;;  %v2517_v52 = vld [vmem:[%s3965_s1] sm:$0xff]  ;;  %vm1183_vm2 = vcmp.gt.s32.totalorder %v2512_v51, 0  ;;  %v2525_v53 = vld [vmem:[%s3965_s1 + $0x10] sm:$0xff]  ;;  %v2532_v57 = vld [vmem:[%s3965_s1 + $0x18] sm:$0xff] }
  0x16   :  { %vm1182_vm1 = vcmp.gt.s32.totalorder %v2517_v52, 0  ;;  %v2071_v56 = vsel %vm1183_vm2, 1.0, %v2322_v54  ;;  %vm1184_vm3 = vcmp.gt.s32.totalorder %v2525_v53, 0  ;;  %vm1185_vm4 = vcmp.gt.s32.totalorder %v2532_v57, 0  ;;  %v134_v59 = vld [vmem:[%s3965_s1 + $0x40] sm:$0xff]  ;;  %v135_v60 = vld [vmem:[%s3965_s1 + $0x48] sm:$0xff] }
  0x17   :  { %339 = vmax.xlane.f32.xlu1 %v338_v23  ;;  %336 = vmax.xlane.f32.xlu0 %v335_v24  ;;  %v2070_v55 = vsel %vm1182_vm1, 1.0, %v2322_v54  ;;  %v2072_v61 = vsel %vm1184_vm3, 1.0, %v2322_v54  ;;  %v2073_v62 = vsel %vm1185_vm4, 1.0, %v2322_v54  ;;  %v133_v63 = vld [vmem:[%s3965_s1 + $0x38] sm:$0xff]  ;;  %vm1190_vm5 = vcmp.gt.s32.totalorder %v134_v59, 0  ;;  %v131_v7 = vld [vmem:[%s3965_s1 + $0x28] sm:$0xff] }
  0x18   :  { %v2109_v58 = vpack.i.bf16 %v2071_v56, %v2070_v55  ;;  %vm1191_vm6 = vcmp.gt.s32.totalorder %v135_v60, 0  ;;  %v2114_v3 = vpack.i.bf16 %v2073_v62, %v2072_v61  ;;  %v2078_v4 = vsel %vm1190_vm5, 1.0, %v2322_v54  ;;  %v2558_v8 = vld [vmem:[%s3965_s1 + $0x20] sm:$0xff]  ;;  %v139_v15 = vld [vmem:[%s3965_s1 + $0x68] sm:$0xff]  ;;  %v137_v20 = vld [vmem:[%s3965_s1 + $0x58] sm:$0xff]  ;;  %s2297_s20 = scalar_lea.hbm %s3968_s4, 16 }
  0x19   :  { %v2079_v6 = vsel %vm1191_vm6, 1.0, %v2322_v54  ;;  %vm1186_vm7 = vcmp.gt.s32.totalorder %v2558_v8, 0  ;;  %vm1187_vm8 = vcmp.gt.s32.totalorder %v131_v7, 0  ;;  %v138_v12 = vld [vmem:[%s3965_s1 + $0x60] sm:$0xff]  ;;  %v2576_v23 = vld [vmem:[%s3965_s1 + $0x30] sm:$0xff]  ;;  %vm1195_vm10 = vcmp.gt.s32.totalorder %v139_v15, 0  ;;  %p2298_p0 = scmp.ne.s32.totalorder %s3968_s4, %s2297_s20  ;;  %p2301_p1 = scmp.lt.u32.totalorder %s2297_s20, %s3968_s4 }
  0x1a   :  { %v2129_v11 = vpack.i.bf16 %v2079_v6, %v2078_v4  ;;  %v2074_v16 = vsel %vm1186_vm7, 1.0, %v2322_v54  ;;  %v2075_v19 = vsel %vm1187_vm8, 1.0, %v2322_v54  ;;  %vm1194_vm9 = vcmp.gt.s32.totalorder %v138_v12, 0  ;;  %v143_v37 = vld [vmem:[%s3965_s1 + $0x88] sm:$0xff]  ;;  %v145_v49 = vld [vmem:[%s3965_s1 + $0x98] sm:$0xff]  ;;  %v144_v62 = vld [vmem:[%s3965_s1 + $0x90] sm:$0xff] }
  0x1b   :  { %345 = vmax.xlane.f32.xlu1 %v344_v27  ;;  %342 = vmax.xlane.f32.xlu0 %v341_v28  ;;  %v2119_v24 = vpack.i.bf16 %v2075_v19, %v2074_v16  ;;  %vm1189_vm11 = vcmp.gt.s32.totalorder %v133_v63, 0  ;;  %vm1188_vm12 = vcmp.gt.s32.totalorder %v2576_v23, 0  ;;  %v2082_v27 = vsel %vm1194_vm9, 1.0, %v2322_v54  ;;  %p2303_p2 = pnand %p2301_p1, %p2298_p0 }
  0x1c   :  { %v2083_v28 = vsel %vm1195_vm10, 1.0, %v2322_v54  ;;  %v2077_v33 = vsel %vm1189_vm11, 1.0, %v2322_v54  ;;  %vm1199_vm14 = vcmp.gt.s32.totalorder %v143_v37, 0  ;;  %vm1193_vm15 = vcmp.gt.s32.totalorder %v137_v20, 0 }
  0x1d   :  { %v2087_v42 = vsel %vm1199_vm14, 1.0, %v2322_v54  ;;  %v2081_v45 = vsel %vm1193_vm15, 1.0, %v2322_v54  ;;  %vm1201_vm6 = vcmp.gt.s32.totalorder %v145_v49, 0  ;;  %vm1200_vm7 = vcmp.gt.s32.totalorder %v144_v62, 0 }
  0x1e   :  { %vm1432_vm14 = vcmask 31744  }
  0x1f   :  { %351 = vmax.xlane.f32.xlu1 %v350_v31  ;;  %348 = vmax.xlane.f32.xlu0 %v347_v32  ;;  %v2139_v31 = vpack.i.bf16 %v2083_v28, %v2082_v27  ;;  %v2076_v32 = vsel %vm1188_vm12, 1.0, %v2322_v54 }
  0x23   :  { %357 = vmax.xlane.f32.xlu1 %v356_v35  ;;  %354 = vmax.xlane.f32.xlu0 %v353_v36  ;;  %v2124_v35 = vpack.i.bf16 %v2077_v33, %v2076_v32  ;;  %v142_v36 = vld [vmem:[%s3965_s1 + $0x80] sm:$0xff] }
  0x24   :  { %vm1198_vm13 = vcmp.gt.s32.totalorder %v142_v36, 0 }
  0x25   :  { %v2086_v41 = vsel %vm1198_vm13, 1.0, %v2322_v54 }
  0x27   :  { %363 = vmax.xlane.f32.xlu1 %v362_v39  ;;  %360 = vmax.xlane.f32.xlu0 %v359_v40  ;;  %v141_v39 = vld [vmem:[%s3965_s1 + $0x78] sm:$0xff]  ;;  %v136_v40 = vld [vmem:[%s3965_s1 + $0x50] sm:$0xff] }
  0x28   :  { %vm1192_vm1 = vcmp.gt.s32.totalorder %v136_v40, 0  ;;  %vm1197_vm4 = vcmp.gt.s32.totalorder %v141_v39, 0 }
  0x2b   :  { %369 = vmax.xlane.f32.xlu1 %v368_v43  ;;  %366 = vmax.xlane.f32.xlu0 %v365_v44  ;;  %v2149_v43 = vpack.i.bf16 %v2087_v42, %v2086_v41  ;;  %v2080_v44 = vsel %vm1192_vm1, 1.0, %v2322_v54 }
  0x2c   :  { %v2134_v46 = vpack.i.bf16 %v2081_v45, %v2080_v44 }
  0x2f   :  { %375 = vmax.xlane.f32.xlu1 %v374_v47  ;;  %372 = vmax.xlane.f32.xlu0 %v371_v48  ;;  %v146_v47 = vld [vmem:[%s3965_s1 + $0xa0] sm:$0xff]  ;;  %v147_v48 = vld [vmem:[%s3965_s1 + $0xa8] sm:$0xff] }
  0x30   :  { %vm1202_vm2 = vcmp.gt.s32.totalorder %v146_v47, 0  ;;  %vm1203_vm3 = vcmp.gt.s32.totalorder %v147_v48, 0 }
  0x31   :  { %v2090_v55 = vsel %vm1202_vm2, 1.0, %v2322_v54  ;;  %v2091_v56 = vsel %vm1203_vm3, 1.0, %v2322_v54  ;;  %vm25_vm3 = vcmask 7168  }
  0x32   :  { %26 = vst.msk [vmem:[#allocation2] sm:$0xff] %vm25_vm3, %v2322_v54  ;;  %76 = vst.msk [vmem:[#allocation4] sm:$0xff] %vm25_vm3, %v2322_v54 }
  0x33   :  { %378 = vmax.xlane.f32.xlu0 %v377_v50  ;;  %v140_v50 = vld [vmem:[%s3965_s1 + $0x70] sm:$0xff]  ;;  %27 = vst.msk [vmem:[#allocation2 + $0x8] sm:$0xff] %vm25_vm3, %v2322_v54  ;;  %28 = vst.msk [vmem:[#allocation2 + $0x10] sm:$0xff] %vm25_vm3, %v2322_v54 }
  0x34   :  { %vm1196_vm5 = vcmp.gt.s32.totalorder %v140_v50, 0  ;;  %29 = vst.msk [vmem:[#allocation2 + $0x18] sm:$0xff] %vm25_vm3, %v2322_v54  ;;  %30 = vst.msk [vmem:[#allocation2 + $0x20] sm:$0xff] %vm25_vm3, %v2322_v54 }
  0x35   :  { %31 = vst.msk [vmem:[#allocation2 + $0x28] sm:$0xff] %vm25_vm3, %v2322_v54  ;;  %32 = vst.msk [vmem:[#allocation2 + $0x30] sm:$0xff] %vm25_vm3, %v2322_v54 }
  0x36   :  { %33 = vst.msk [vmem:[#allocation2 + $0x38] sm:$0xff] %vm25_vm3, %v2322_v54  ;;  %34 = vst.msk [vmem:[#allocation2 + $0x40] sm:$0xff] %vm25_vm3, %v2322_v54 }
  0x37   :  { %35 = vst.msk [vmem:[#allocation2 + $0x48] sm:$0xff] %vm25_vm3, %v2322_v54  ;;  %36 = vst.msk [vmem:[#allocation2 + $0x50] sm:$0xff] %vm25_vm3, %v2322_v54 }
  0x38   :  { %37 = vst.msk [vmem:[#allocation2 + $0x58] sm:$0xff] %vm25_vm3, %v2322_v54  ;;  %38 = vst.msk [vmem:[#allocation2 + $0x60] sm:$0xff] %vm25_vm3, %v2322_v54 }
  0x39   :  { %39 = vst.msk [vmem:[#allocation2 + $0x68] sm:$0xff] %vm25_vm3, %v2322_v54  ;;  %40 = vst.msk [vmem:[#allocation2 + $0x70] sm:$0xff] %vm25_vm3, %v2322_v54 }
  0x3a   :  { %41 = vst.msk [vmem:[#allocation2 + $0x78] sm:$0xff] %vm25_vm3, %v2322_v54  ;;  %42 = vst.msk [vmem:[#allocation2 + $0x80] sm:$0xff] %vm25_vm3, %v2322_v54 }
  0x3b   :  { %43 = vst.msk [vmem:[#allocation2 + $0x88] sm:$0xff] %vm25_vm3, %v2322_v54  ;;  %44 = vst.msk [vmem:[#allocation2 + $0x90] sm:$0xff] %vm25_vm3, %v2322_v54 }
  0x3c   :  { %45 = vst.msk [vmem:[#allocation2 + $0x98] sm:$0xff] %vm25_vm3, %v2322_v54  ;;  %46 = vst.msk [vmem:[#allocation2 + $0xa0] sm:$0xff] %vm25_vm3, %v2322_v54 }
  0x3d   :  { %47 = vst.msk [vmem:[#allocation2 + $0xa8] sm:$0xff] %vm25_vm3, %v2322_v54  ;;  %48 = vst.msk [vmem:[#allocation2 + $0xb0] sm:$0xff] %vm25_vm3, %v2322_v54 }
  0x3e   :  { %49 = vst.msk [vmem:[#allocation2 + $0xb8] sm:$0xff] %vm25_vm3, %v2322_v54  ;;  %50 = vst.msk [vmem:[#allocation2 + $0xc0] sm:$0xff] %vm25_vm3, %v2322_v54 }
  0x3f   :  { %51 = vst.msk [vmem:[#allocation3] sm:$0xff] %vm25_vm3, %v2322_v54  ;;  %52 = vst.msk [vmem:[#allocation3 + $0x8] sm:$0xff] %vm25_vm3, %v2322_v54 }
  0x40   :  { %583 = vperm.xlu1 %2107, %v2517_v52   ;;  %53 = vst.msk [vmem:[#allocation3 + $0x10] sm:$0xff] %vm25_vm3, %v2322_v54  ;;  %54 = vst.msk [vmem:[#allocation3 + $0x18] sm:$0xff] %vm25_vm3, %v2322_v54 }
  0x41   :  { %55 = vst.msk [vmem:[#allocation3 + $0x20] sm:$0xff] %vm25_vm3, %v2322_v54  ;;  %56 = vst.msk [vmem:[#allocation3 + $0x28] sm:$0xff] %vm25_vm3, %v2322_v54 }
  0x42   :  { %57 = vst.msk [vmem:[#allocation3 + $0x30] sm:$0xff] %vm25_vm3, %v2322_v54  ;;  %58 = vst.msk [vmem:[#allocation3 + $0x38] sm:$0xff] %vm25_vm3, %v2322_v54 }
  0x43   :  { %59 = vst.msk [vmem:[#allocation3 + $0x40] sm:$0xff] %vm25_vm3, %v2322_v54  ;;  %60 = vst.msk [vmem:[#allocation3 + $0x48] sm:$0xff] %vm25_vm3, %v2322_v54 }
  0x44   :  { %589 = vperm.xlu1 %2107, %v2525_v53   ;;  %61 = vst.msk [vmem:[#allocation3 + $0x50] sm:$0xff] %vm25_vm3, %v2322_v54  ;;  %62 = vst.msk [vmem:[#allocation3 + $0x58] sm:$0xff] %vm25_vm3, %v2322_v54 }
  0x45   :  { %63 = vst.msk [vmem:[#allocation3 + $0x60] sm:$0xff] %vm25_vm3, %v2322_v54  ;;  %64 = vst.msk [vmem:[#allocation3 + $0x68] sm:$0xff] %vm25_vm3, %v2322_v54 }
  0x46   :  { %65 = vst.msk [vmem:[#allocation3 + $0x70] sm:$0xff] %vm25_vm3, %v2322_v54  ;;  %66 = vst.msk [vmem:[#allocation3 + $0x78] sm:$0xff] %vm25_vm3, %v2322_v54 }
  0x47   :  { %67 = vst.msk [vmem:[#allocation3 + $0x80] sm:$0xff] %vm25_vm3, %v2322_v54  ;;  %68 = vst.msk [vmem:[#allocation3 + $0x88] sm:$0xff] %vm25_vm3, %v2322_v54 }
  0x48   :  { %2110 = vperm.xlu1 %2107, %v2109_v58   ;;  %v2159_v58 = vpack.i.bf16 %v2091_v56, %v2090_v55  ;;  %69 = vst.msk [vmem:[#allocation3 + $0x90] sm:$0xff] %vm25_vm3, %v2322_v54  ;;  %70 = vst.msk [vmem:[#allocation3 + $0x98] sm:$0xff] %vm25_vm3, %v2322_v54 }
  0x49   :  { %586 = vperm.xlu0 %2108, %v2512_v51   ;;  %71 = vst.msk [vmem:[#allocation3 + $0xa0] sm:$0xff] %vm25_vm3, %v2322_v54  ;;  %72 = vst.msk [vmem:[#allocation3 + $0xa8] sm:$0xff] %vm25_vm3, %v2322_v54 }
  0x4a   :  { %73 = vst.msk [vmem:[#allocation3 + $0xb0] sm:$0xff] %vm25_vm3, %v2322_v54  ;;  %74 = vst.msk [vmem:[#allocation3 + $0xb8] sm:$0xff] %vm25_vm3, %v2322_v54 }
  0x4b   :  { %75 = vst.msk [vmem:[#allocation3 + $0xc0] sm:$0xff] %vm25_vm3, %v2322_v54  ;;  %77 = vst.msk [vmem:[#allocation4 + $0x8] sm:$0xff] %vm25_vm3, %v2322_v54 }
  0x4c   :  { %592 = vperm.xlu1 %2107, %v2532_v57   ;;  %78 = vst.msk [vmem:[#allocation4 + $0x10] sm:$0xff] %vm25_vm3, %v2322_v54  ;;  %79 = vst.msk [vmem:[#allocation4 + $0x18] sm:$0xff] %vm25_vm3, %v2322_v54 }
  0x4d   :  { %604 = vperm.xlu0 %2108, %v133_v63   ;;  %v2088_v63 = vsel %vm1200_vm7, 1.0, %v2322_v54  ;;  %80 = vst.msk [vmem:[#allocation4 + $0x20] sm:$0xff] %vm25_vm3, %v2322_v54  ;;  %81 = vst.msk [vmem:[#allocation4 + $0x28] sm:$0xff] %vm25_vm3, %v2322_v54 }
  0x4e   :  { %82 = vst.msk [vmem:[#allocation4 + $0x30] sm:$0xff] %vm25_vm3, %v2322_v54  ;;  %83 = vst.msk [vmem:[#allocation4 + $0x38] sm:$0xff] %vm25_vm3, %v2322_v54 }
  0x4f   :  { %84 = vst.msk [vmem:[#allocation4 + $0x40] sm:$0xff] %vm25_vm3, %v2322_v54  ;;  %85 = vst.msk [vmem:[#allocation4 + $0x48] sm:$0xff] %vm25_vm3, %v2322_v54 }
  0x50   :  { %2115 = vperm.xlu1 %2107, %v2114_v3   ;;  %v2089_v3 = vsel %vm1201_vm6, 1.0, %v2322_v54  ;;  %86 = vst.msk [vmem:[#allocation4 + $0x50] sm:$0xff] %vm25_vm3, %v2322_v54  ;;  %87 = vst.msk [vmem:[#allocation4 + $0x58] sm:$0xff] %vm25_vm3, %v2322_v54 }
  0x51   :  { %607 = vperm.xlu0 %2108, %v134_v59   ;;  %v2084_v59 = vsel %vm1196_vm5, 1.0, %v2322_v54  ;;  %v2154_v4 = vpack.i.bf16 %v2089_v3, %v2088_v63  ;;  %88 = vst.msk [vmem:[#allocation4 + $0x60] sm:$0xff] %vm25_vm3, %v2322_v54  ;;  %89 = vst.msk [vmem:[#allocation4 + $0x68] sm:$0xff] %vm25_vm3, %v2322_v54  ;;  %vm782_vm5 = vcmp.ge.s32.totalorder %v2517_v52, 0 }
  0x52   :  { %90 = vst.msk [vmem:[#allocation4 + $0x70] sm:$0xff] %vm25_vm3, %v2322_v54  ;;  %91 = vst.msk [vmem:[#allocation4 + $0x78] sm:$0xff] %vm25_vm3, %v2322_v54 }
  0x53   :  { %92 = vst.msk [vmem:[#allocation4 + $0x80] sm:$0xff] %vm25_vm3, %v2322_v54  ;;  %93 = vst.msk [vmem:[#allocation4 + $0x88] sm:$0xff] %vm25_vm3, %v2322_v54 }
  0x54   :  { %595 = vperm.xlu1 %2107, %v2558_v8   ;;  %94 = vst.msk [vmem:[#allocation4 + $0x90] sm:$0xff] %vm25_vm3, %v2322_v54  ;;  %95 = vst.msk [vmem:[#allocation4 + $0x98] sm:$0xff] %vm25_vm3, %v2322_v54 }
  0x55   :  { %2130 = vperm.xlu0 %2108, %v2129_v11   ;;  %96 = vst.msk [vmem:[#allocation4 + $0xa0] sm:$0xff] %vm25_vm3, %v2322_v54  ;;  %97 = vst.msk [vmem:[#allocation4 + $0xa8] sm:$0xff] %vm25_vm3, %v2322_v54 }
  0x56   :  { %98 = vst.msk [vmem:[#allocation4 + $0xb0] sm:$0xff] %vm25_vm3, %v2322_v54  ;;  %99 = vst.msk [vmem:[#allocation4 + $0xb8] sm:$0xff] %vm25_vm3, %v2322_v54 }
  0x57   :  { %100 = vst.msk [vmem:[#allocation4 + $0xc0] sm:$0xff] %vm25_vm3, %v2322_v54 }
  0x58   :  { %598 = vperm.xlu1 %2107, %v131_v7  }
  0x59   :  { %616 = vperm.xlu0 %2108, %v137_v20  }
  0x5c   :  { %2120 = vperm.xlu1 %2107, %v2119_v24  }
  0x5d   :  { %619 = vperm.xlu0 %2108, %v138_v12  }
  0x60   :  { %601 = vperm.xlu1 %2107, %v2576_v23  }
  0x61   :  { %2140 = vperm.xlu0 %2108, %v2139_v31  }
  0x64   :  { %2125 = vperm.xlu1 %2107, %v2124_v35  }
  0x65   :  { %628 = vperm.xlu0 %2108, %v141_v39  }
  0x68   :  { %610 = vperm.xlu1 %2107, %v135_v60   ;;  %v2085_v60 = vsel %vm1197_vm4, 1.0, %v2322_v54 }
  0x69   :  { %631 = vperm.xlu0 %2108, %v142_v36   ;;  %v2144_v61 = vpack.i.bf16 %v2085_v60, %v2084_v59 }
  0x6c   :  { %613 = vperm.xlu1 %2107, %v136_v40  }
  0x6d   :  { %2150 = vperm.xlu0 %2108, %v2149_v43  }
  0x70   :  { %2135 = vperm.xlu1 %2107, %v2134_v46  }
  0x71   :  { %640 = vperm.xlu0 %2108, %v145_v49  }
  0x74   :  { %622 = vperm.xlu1 %2107, %v139_v15  }
  0x75   :  { %643 = vperm.xlu0 %2108, %v146_v47  }
  0x78   :  { %625 = vperm.xlu1 %2107, %v140_v50  }
  0x79   :  { %2160 = vperm.xlu0 %2108, %v2159_v58  }
  0x7c   :  { %2145 = vperm.xlu1 %2107, %v2144_v61  }
  0x80   :  { %634 = vperm.xlu1 %2107, %v143_v37  }
  0x84   :  { %637 = vperm.xlu1 %2107, %v144_v62  }
  0x88   :  { %2155 = vperm.xlu1 %2107, %v2154_v4  }
  0x8c   :  { %646 = vperm.xlu1 %2107, %v147_v48  }
  0x90   :  { %v313_v6 = vpop.xlane.xlu1 %312  ;;  %v307_v7 = vpop.xlane.xlu0 %306 }
  0x91   :  { %v2633_v28 = vsub.f32 %v2363_v1, %v307_v7  ;;  %v2640_v33 = vsub.f32 %v2358_v0, %v313_v6 }
  0x93   :  { %v405_v35 = vmul.f32 1.442695, %v2633_v28  ;;  %v409_v40 = vmul.f32 1.442695, %v2640_v33 }
  0x94   :  { %v316_v11 = vpop.xlane.xlu1 %315  ;;  %v310_v12 = vpop.xlane.xlu0 %309 }
  0x95   :  { %v2622_v15 = vsub.f32 %v2368_v2, %v316_v11  ;;  %v2625_v16 = vsub.f32 %v2377_v5, %v310_v12 }
  0x97   :  { %v407_v19 = vmul.f32 1.442695, %v2625_v16  ;;  %v411_v20 = vmul.f32 1.442695, %v2622_v15 }
  0x98   :  { %v322_v24 = vpop.xlane.xlu1 %321  ;;  %v319_v31 = vpop.xlane.xlu0 %318 }
  0x99   :  { %v2630_v27 = vsub.f32 %v2386_v9, %v322_v24  ;;  %2169 = vpow2.f32 %v407_v19  ;;  %v2644_v9 = vsub.f32 %v2391_v10, %v319_v31 }
  0x9a   :  { %2171 = vpow2.f32 %v411_v20 }
  0x9b   :  { %v415_v2 = vmul.f32 1.442695, %v2630_v27 }
  0x9c   :  { %v328_v32 = vpop.xlane.xlu1 %327  ;;  %v325_v39 = vpop.xlane.xlu0 %324 }
  0x9d   :  { %v2637_v5 = vsub.f32 %v2400_v13, %v328_v32  ;;  %2173 = vpow2.f32 %v415_v2  ;;  %v413_v13 = vmul.f32 1.442695, %v2644_v9  ;;  %v2654_v10 = vsub.f32 %v2405_v14, %v325_v39 }
  0x9e   :  { %2175 = vpow2.f32 %v405_v35  ;;  %v148_v35 = vld [vmem:[%s3965_s1 + $0xb0] sm:$0xff] }
  0x9f   :  { %v419_v1 = vmul.f32 1.442695, %v2637_v5  ;;  %v417_v45 = vmul.f32 1.442695, %v2654_v10  ;;  %vm1204_vm9 = vcmp.gt.s32.totalorder %v148_v35, 0 }
  0xa0   :  { %v334_v36 = vpop.xlane.xlu1 %333 }
  0xa1   :  { %v2648_v37 = vsub.f32 %v2414_v17, %v334_v36  ;;  %2177 = vpow2.f32 %v419_v1  ;;  %v331_v17 = vpop.xlane.xlu0 %330  ;;  %v149_v36 = vld [vmem:[%s3965_s1 + $0xb8] sm:$0xff] }
  0xa2   :  { %2179 = vpow2.f32 %v409_v40  ;;  %v2661_v46 = vsub.f32 %v2419_v18, %v331_v17  ;;  %vm1205_vm8 = vcmp.gt.s32.totalorder %v149_v36, 0  ;;  %v150_v40 = vld [vmem:[%s3965_s1 + $0xc0] sm:$0xff] }
  0xa3   :  { %v2170_v0 = vpop.eup %2169  ;;  %v423_v41 = vmul.f32 1.442695, %v2648_v37  ;;  %2181 = vpow2.f32 %v413_v13  ;;  %v2092_v13 = vsel %vm1204_vm9, 1.0, %v2322_v54  ;;  %vm1206_vm10 = vcmp.gt.s32.totalorder %v150_v40, 0 }
  0xa4   :  { %v2656_v42 = vpop.xlane.xlu1 %339  ;;  %v458_v43 = vsel %vm304_vm0, %v2170_v0, 0.0  ;;  %v2172_v44 = vpop.eup %2171  ;;  %v421_v50 = vmul.f32 1.442695, %v2661_v46  ;;  %v2093_v0 = vsel %vm1205_vm8, 1.0, %v2322_v54  ;;  %vm784_vm9 = vcmp.ge.s32.totalorder %v2525_v53, 0 }
  0xa5   :  { %459 = vadd.xlane.f32.xlu0 %v458_v43  ;;  %2183 = vpow2.f32 %v423_v41  ;;  %v464_v14 = vsel %vm304_vm0, %v2172_v44, 0.0  ;;  %v337_v2 = vpop.xlane.xlu0 %336  ;;  %v2164_v43 = vpack.i.bf16 %v2093_v0, %v2092_v13 }
  0xa6   :  { %2185 = vpow2.f32 %v417_v45  ;;  %v2094_v45 = vsel %vm1206_vm10, 1.0, %v2322_v54 }
  0xa7   :  { %v2174_v48 = vpop.eup %2173  ;;  %2187 = vpow2.f32 %v421_v50  ;;  %v957_v50 = vld [vmem:[%s3967_s3] sm:$0xff] }
  0xa8   :  { %v2663_v47 = vpop.xlane.xlu1 %345  ;;  %v2176_v49 = vpop.eup %2175  ;;  %v470_v56 = vsel %vm304_vm0, %v2174_v48, 0.0 }
  0xa9   :  { %465 = vadd.xlane.f32.xlu0 %v464_v14  ;;  %v455_v59 = vsel %vm304_vm0, %v2176_v49, 0.0  ;;  %v343_v1 = vpop.xlane.xlu0 %342  ;;  %v932_v49 = vld [vmem:[%s3966_s2] sm:$0xff] }
  0xab   :  { %v2178_v58 = vpop.eup %2177 }
  0xac   :  { %v2667_v55 = vpop.xlane.xlu1 %351  ;;  %v2180_v18 = vpop.eup %2179  ;;  %v476_v62 = vsel %vm304_vm0, %v2178_v58, 0.0  ;;  %v982_v58 = vsub.f32 %v932_v49, %v957_v50 }
  0xad   :  { %471 = vadd.xlane.f32.xlu0 %v470_v56  ;;  %v2182_v61 = vpop.eup %2181  ;;  %v461_v3 = vsel %vm304_vm0, %v2180_v18, 0.0  ;;  %v2696_v41 = vpop.xlane.xlu0 %348  ;;  %v3073_v53 = vsub.f32 %v2456_v29, %v2667_v55 }
  0xae   :  { %v467_v7 = vsel %vm304_vm0, %v2182_v61, 0.0  ;;  %v1007_v61 = vand.u32 2147483647, %v982_v58 }
  0xaf   :  { %v2184_v63 = vpop.eup %2183 }
  0xb0   :  { %v2671_v60 = vpop.xlane.xlu1 %357  ;;  %456 = vadd.xlane.f32.xlu1 %v455_v59  ;;  %v482_v6 = vsel %vm304_vm0, %v2184_v63, 0.0  ;;  %v2186_v11 = vpop.eup %2185  ;;  %v580_v59 = vlaneseq  ;;  %v934_v63 = vld [vmem:[%s3966_s2 + $0x10] sm:$0xff]  ;;  %v2045_v13 = vadd.f32 -0.5, %v1007_v61  ;;  %vm1057_vm13 = vcmp.ge.f32.partialorder %v1007_v61, 1.0 }
  0xb1   :  { %477 = vadd.xlane.f32.xlu0 %v476_v62  ;;  %v473_v12 = vsel %vm304_vm0, %v2186_v11, 0.0  ;;  %v2188_v19 = vpop.eup %2187  ;;  %v2700_v17 = vpop.xlane.xlu0 %354  ;;  %v933_v11 = vld [vmem:[%s3966_s2 + $0x8] sm:$0xff] }
  0xb2   :  { %v479_v24 = vsel %vm304_vm0, %v2188_v19, 0.0  ;;  %v2717_v62 = vand.u32 127, %v580_v59 }
  0xb4   :  { %462 = vadd.xlane.f32.xlu1 %v461_v3  ;;  %v2675_v4 = vpop.xlane.xlu1 %363  ;;  %v959_v3 = vld [vmem:[%s3967_s3 + $0x10] sm:$0xff] }
  0xb5   :  { %483 = vadd.xlane.f32.xlu0 %v482_v6  ;;  %v2705_v48 = vpop.xlane.xlu0 %360  ;;  %v2726_v6 = vsub.f32 %v2433_v22, %v337_v2 }
  0xb8   :  { %468 = vadd.xlane.f32.xlu1 %v467_v7  ;;  %v2680_v20 = vpop.xlane.xlu1 %369 }
  0xb9   :  { %v2715_v18 = vpop.xlane.xlu0 %366 }
  0xbc   :  { %474 = vadd.xlane.f32.xlu1 %v473_v12  ;;  %v2683_v31 = vpop.xlane.xlu1 %375  ;;  %v958_v12 = vld [vmem:[%s3967_s3 + $0x8] sm:$0xff] }
  0xbd   :  { %v2736_v19 = vpop.xlane.xlu0 %372  ;;  %v983_v22 = vsub.f32 %v933_v11, %v958_v12  ;;  %v2772_v12 = vld [vmem:[%s3967_s3 + $0x18] sm:$0xff] }
  0xbf   :  { %v2746_v49 = vand.u32 2147483647, %v983_v22 }
  0xc0   :  { %480 = vadd.xlane.f32.xlu1 %v479_v24  ;;  %v584_v32 = vpop.permute.xlu1 %583  ;;  %v1107_v24 = vmul.f32 %v1007_v61, %v1007_v61  ;;  %v2758_v61 = vsub.f32 %v2447_v26, %v343_v1  ;;  %v2777_v26 = vsub.f32 %v2428_v21, %v2656_v42 }
  0xc1   :  { %vm657_vm11 = vcmp.eq.s32.totalorder %v2717_v62, %v584_v32  ;;  %v1108_v11 = vmul.f32 %v2746_v49, %v2746_v49  ;;  %vm1058_vm1 = vcmp.ge.f32.partialorder %v2746_v49, 1.0 }
  0xc2   :  { %v1132_v0 = vmul.f32 0.5, %v1107_v24 }
  0xc3   :  { %v2790_v21 = vmul.f32 0.5, %v1108_v11 }
  0xc4   :  { %v590_v39 = vpop.permute.xlu1 %589  ;;  %v1157_v59 = vsel %vm1057_vm13, %v2045_v13, %v1132_v0  ;;  %v2784_v0 = vmul.f32 1.442695, %v2758_v61 }
  0xc5   :  { %vm659_vm12 = vcmp.eq.s32.totalorder %v2717_v62, %v590_v39  ;;  %v961_v39 = vld [vmem:[%s3967_s3 + $0x20] sm:$0xff] }
  0xc6   :  { %v684_v58 = vsel %vm659_vm12, %v2640_v33, 0.0  ;;  %v2767_v33 = vld [vmem:[%s3966_s2 + $0x18] sm:$0xff] }
  0xc7   :  { %v713_v24 = vsel %vm304_vm0, %v684_v58, 0.0  ;;  %v985_v13 = vsub.f32 %v2767_v33, %v2772_v12  ;;  %v2799_v58 = vmul.f32 1.442695, %v2777_v26 }
  0xc8   :  { %v2698_v44 = vpop.permute.xlu1 %2110 }
  0xc9   :  { %v2112_v32 = vunpack.i.l.bf16 %v2698_v44  ;;  %v1010_v11 = vand.u32 2147483647, %v985_v13 }
  0xcb   :  { %652 = vperm.xlu0 %2108, %v149_v36   ;;  %v425_v36 = vmul.f32 1.442695, %v2726_v6  ;;  %v1110_v12 = vmul.f32 %v1010_v11, %v1010_v11  ;;  %vm1060_vm8 = vcmp.ge.f32.partialorder %v1010_v11, 1.0 }
  0xcc   :  { %v2703_v14 = vpop.permute.xlu1 %592 }
  0xcd   :  { %2189 = vpow2.f32 %v425_v36  ;;  %vm660_vm6 = vcmp.eq.s32.totalorder %v2717_v62, %v2703_v14 }
  0xce   :  { %2191 = vpow2.f32 %v2784_v0 }
  0xcf   :  { %655 = vperm.xlu0 %2108, %v150_v40   ;;  %v682_v40 = vsel %vm657_vm11, %v2633_v28, 0.0  ;;  %2193 = vpow2.f32 %v2799_v58 }
  0xd0   :  { %v2713_v56 = vpop.permute.xlu1 %2115  ;;  %v707_v50 = vsel %vm304_vm0, %v682_v40, 0.0 }
  0xd1   :  { %649 = vperm.xlu1 %2107, %v148_v35   ;;  %v984_v35 = vsub.f32 %v934_v63, %v959_v3  ;;  %v936_v63 = vld [vmem:[%s3966_s2 + $0x20] sm:$0xff]  ;;  %v2117_v42 = vunpack.i.l.bf16 %v2713_v56 }
  0xd2   :  { %v986_v40 = vsub.f32 %v936_v63, %v961_v39  ;;  %v2113_v39 = vunpack.i.h.bf16 %v2698_v44 }
  0xd4   :  { %v2728_v7 = vpop.permute.xlu1 %595  ;;  %v2805_v63 = vand.u32 2147483647, %v986_v40  ;;  %v2989_v40 = vsub.f32 %v2461_v30, %v2696_v41  ;;  %v962_v30 = vld [vmem:[%s3967_s3 + $0x28] sm:$0xff]  ;;  %v3006_v41 = vsub.f32 %v2442_v25, %v2663_v47  ;;  %v685_v25 = vsel %vm660_vm6, %v2622_v15, 0.0 }
  0xd5   :  { %2165 = vperm.xlu1 %2107, %v2164_v43   ;;  %v1009_v43 = vand.u32 2147483647, %v984_v35  ;;  %v1407_v35 = vmul.f32 %v2112_v32, %v1157_v59  ;;  %v2788_v32 = vadd.f32 -0.5, %v2746_v49  ;;  %vm661_vm4 = vcmp.eq.s32.totalorder %v2717_v62, %v2728_v7  ;;  %v1659_v7 = vld [vmem:[#allocation4] sm:$0xff] }
  0xd6   :  { %v1111_v33 = vmul.f32 %v2805_v63, %v2805_v63  ;;  %vm1061_vm7 = vcmp.ge.f32.partialorder %v2805_v63, 1.0 }
  0xd7   :  { %v1109_v28 = vmul.f32 %v1009_v43, %v1009_v43  ;;  %v2047_v36 = vadd.f32 -0.5, %v1009_v43  ;;  %vm1059_vm15 = vcmp.ge.f32.partialorder %v1009_v43, 1.0  ;;  %v1433_v43 = vsel %vm1432_vm14, %v1407_v35, 0.0 }
  0xd8   :  { %v2740_v2 = vpop.permute.xlu1 %598  ;;  %v1158_v35 = vsel %vm1058_vm1, %v2788_v32, %v2790_v21  ;;  %v2049_v32 = vadd.f32 -0.5, %v2805_v63  ;;  %v937_v21 = vld [vmem:[%s3966_s2 + $0x28] sm:$0xff] }
  0xd9   :  { %1404 = vperm.xlu1 %2107, %v2094_v45   ;;  %v2744_v45 = vpop.xlane.xlu0 %378  ;;  %v1134_v22 = vmul.f32 0.5, %v1109_v28  ;;  %v1408_v49 = vmul.f32 %v2113_v39, %v1158_v35  ;;  %v1135_v39 = vmul.f32 0.5, %v1110_v12  ;;  %v987_v47 = vsub.f32 %v937_v21, %v962_v30 }
  0xda   :  { %v2118_v12 = vunpack.i.h.bf16 %v2713_v56  ;;  %v940_v56 = vld [vmem:[%s3966_s2 + $0x40] sm:$0xff]  ;;  %vm662_vm11 = vcmp.eq.s32.totalorder %v2717_v62, %v2740_v2 }
  0xdb   :  { %v2803_v28 = vsel %vm1059_vm15, %v2047_v36, %v1134_v22  ;;  %v963_v22 = vld [vmem:[%s3967_s3 + $0x30] sm:$0xff]  ;;  %v1436_v58 = vsel %vm1432_vm14, %v1408_v49, 0.0  ;;  %v687_v29 = vsel %vm662_vm11, %v2630_v27, 0.0  ;;  %vm783_vm15 = vcmp.ge.s32.totalorder %v2512_v51, 0 }
  0xdc   :  { %v2760_v3 = vpop.permute.xlu1 %2120  ;;  %v1409_v44 = vmul.f32 %v2117_v42, %v2803_v28  ;;  %v686_v42 = vsel %vm661_vm4, %v2644_v9, 0.0  ;;  %v2048_v28 = vadd.f32 -0.5, %v1010_v11  ;;  %v3022_v9 = vsel %vm782_vm5, 1.0, %v2322_v54  ;;  %v967_v51 = vld [vmem:[%s3967_s3 + $0x50] sm:$0xff] }
  0xdd   :  { %v2779_v1 = vpop.permute.xlu0 %586  ;;  %v2122_v35 = vunpack.i.l.bf16 %v2760_v3  ;;  %v2123_v27 = vunpack.i.h.bf16 %v2760_v3  ;;  %v722_v2 = vsel %vm304_vm0, %v687_v29, 0.0  ;;  %vm785_vm5 = vcmp.ge.s32.totalorder %v2532_v57, 0 }
  0xde   :  { %vm658_vm2 = vcmp.eq.s32.totalorder %v2717_v62, %v2779_v1  ;;  %v938_v1 = vld [vmem:[%s3966_s2 + $0x30] sm:$0xff]  ;;  %v1439_v0 = vsel %vm1432_vm14, %v1409_v44, 0.0  ;;  %v1684_v44 = vadd.f32 %v3022_v9, %v1659_v7 }
  0xe0   :  { %v2801_v59 = vpop.permute.xlu1 %601  ;;  %1709 = vst.msk [vmem:[#allocation4] sm:$0xff] %vm25_vm3, %v1684_v44 }
  0xe1   :  { %v3028_v49 = vpop.permute.xlu0 %604  ;;  %vm663_vm10 = vcmp.eq.s32.totalorder %v2717_v62, %v2801_v59 }
  0xe2   :  { %vm664_vm4 = vcmp.eq.s32.totalorder %v2717_v62, %v3028_v49 }
  0xe4   :  { %v2991_v13 = vpop.permute.xlu1 %2125 }
  0xe8   :  { %v3030_v15 = vpop.permute.xlu1 %610 }
  0xe9   :  { %vm666_vm11 = vcmp.eq.s32.totalorder %v2717_v62, %v3030_v15 }
  0xee   :  { %708 = vadd.xlane.f32.xlu0 %v707_v50  ;;  %v2796_v50 = vpop.eup %2189 }
  0xef   :  { %v485_v36 = vsel %vm304_vm0, %v2796_v50, 0.0  ;;  %v988_v50 = vsub.f32 %v938_v1, %v963_v22  ;;  %v716_v1 = vsel %vm304_vm0, %v685_v25, 0.0  ;;  %v1160_v22 = vsel %vm1060_vm8, %v2048_v28, %v1135_v39  ;;  %v3054_v28 = vpop.permute.xlu1 %613  ;;  %v1661_v25 = vld [vmem:[#allocation4 + $0x10] sm:$0xff] }
  0xf0   :  { %vm667_vm8 = vcmp.eq.s32.totalorder %v2717_v62, %v3054_v28  ;;  %v691_v28 = vsel %vm666_vm11, %v2648_v37, 0.0 }
  0xf1   :  { %v1013_v14 = vand.u32 2147483647, %v988_v50  ;;  %v3050_v50 = vsub.f32 %v2473_v34, %v2700_v17  ;;  %v939_v34 = vld [vmem:[%s3966_s2 + $0x38] sm:$0xff] }
  0xf2   :  { %714 = vadd.xlane.f32.xlu0 %v713_v24  ;;  %v683_v24 = vsel %vm658_vm2, %v2625_v16, 0.0  ;;  %v964_v17 = vld [vmem:[%s3967_s3 + $0x38] sm:$0xff]  ;;  %vm786_vm2 = vcmp.ge.s32.totalorder %v2558_v8, 0 }
  0xf3   :  { %v710_v16 = vsel %vm304_vm0, %v683_v24, 0.0  ;;  %v433_v24 = vmul.f32 1.442695, %v2989_v40  ;;  %v1113_v63 = vmul.f32 %v1013_v14, %v1013_v14  ;;  %v2051_v44 = vadd.f32 -0.5, %v1013_v14 }
  0xf4   :  { %vm1063_vm12 = vcmp.ge.f32.partialorder %v1013_v14, 1.0 }
  0xf5   :  { %2195 = vpow2.f32 %v433_v24  ;;  %v3059_v24 = vsel %vm784_vm9, 1.0, %v2322_v54 }
  0xf6   :  { %1434 = vadd.xlane.f32.xlu0 %v1433_v43  ;;  %v1136_v43 = vmul.f32 0.5, %v1111_v33  ;;  %v2192_v33 = vpop.eup %2191 }
  0xf7   :  { %v2194_v11 = vpop.eup %2193  ;;  %v491_v21 = vsel %vm304_vm0, %v2192_v33, 0.0  ;;  %v1138_v33 = vmul.f32 0.5, %v1113_v63 }
  0xf8   :  { %v1161_v52 = vsel %vm1061_vm7, %v2049_v32, %v1136_v43  ;;  %v965_v32 = vld [vmem:[%s3967_s3 + $0x40] sm:$0xff]  ;;  %v1410_v43 = vmul.f32 %v2118_v12, %v1160_v22  ;;  %v437_v12 = vmul.f32 1.442695, %v3050_v50  ;;  %v435_v22 = vmul.f32 1.442695, %v3073_v53 }
  0xf9   :  { %v1411_v30 = vmul.f32 %v2122_v35, %v1161_v52  ;;  %v990_v7 = vsub.f32 %v940_v56, %v965_v32  ;;  %v1686_v35 = vadd.f32 %v3059_v24, %v1661_v25  ;;  %v1163_v63 = vsel %vm1063_vm12, %v2051_v44, %v1138_v33  ;;  %v941_v33 = vld [vmem:[%s3966_s2 + $0x48] sm:$0xff] }
  0xfa   :  { %486 = vadd.xlane.f32.xlu0 %v485_v36  ;;  %v719_v36 = vsel %vm304_vm0, %v686_v42, 0.0  ;;  %v488_v42 = vsel %vm304_vm0, %v2194_v11, 0.0 }
  0xfb   :  { %1711 = vst.msk [vmem:[#allocation4 + $0x10] sm:$0xff] %vm25_vm3, %v1686_v35  ;;  %v1015_v56 = vand.u32 2147483647, %v990_v7  ;;  %v3108_v7 = vsel %vm783_vm15, 1.0, %v2322_v54 }
  0xfd   :  { %711 = vadd.xlane.f32.xlu1 %v710_v16  ;;  %v431_v16 = vmul.f32 1.442695, %v3006_v41  ;;  %v1115_v25 = vmul.f32 %v1015_v56, %v1015_v56  ;;  %vm1065_vm6 = vcmp.ge.f32.partialorder %v1015_v56, 1.0 }
  0xfe   :  { %1440 = vadd.xlane.f32.xlu0 %v1439_v0  ;;  %v1012_v0 = vand.u32 2147483647, %v987_v47  ;;  %v1445_v47 = vsel %vm1432_vm14, %v1411_v30, 0.0  ;;  %v3091_v30 = vpop.permute.xlu1 %2135 }
  0xff   :  { %2197 = vpow2.f32 %v431_v16  ;;  %v1442_v16 = vsel %vm1432_vm14, %v1410_v43, 0.0  ;;  %v2196_v11 = vpop.eup %2195 }
 0x100   :  { %v1112_v39 = vmul.f32 %v1012_v0, %v1012_v0  ;;  %v2050_v52 = vadd.f32 -0.5, %v1012_v0  ;;  %vm1062_vm13 = vcmp.ge.f32.partialorder %v1012_v0, 1.0  ;;  %2199 = vpow2.f32 %v437_v12  ;;  %v2271_v12 = vld [vmem:[%s3964_s0 + $0x88] sm:$0xff] }
 0x101   :  { %1437 = vadd.xlane.f32.xlu1 %v1436_v58  ;;  %v3052_v58 = vpop.permute.xlu0 %607  ;;  %v497_v43 = vsel %vm304_vm0, %v2196_v11, 0.0  ;;  %2201 = vpow2.f32 %v435_v22  ;;  %v3133_v29 = vsub.f32 %v2271_v12, %v2671_v60  ;;  %v689_v60 = vsel %vm664_vm4, %v2637_v5, 0.0 }
 0x102   :  { %720 = vadd.xlane.f32.xlu0 %v719_v36  ;;  %v688_v36 = vsel %vm663_vm10, %v2654_v10, 0.0  ;;  %v1137_v55 = vmul.f32 0.5, %v1112_v39  ;;  %v2127_v10 = vunpack.i.l.bf16 %v2991_v13  ;;  %vm665_vm1 = vcmp.eq.s32.totalorder %v2717_v62, %v3052_v58 }
 0x103   :  { %v725_v59 = vsel %vm304_vm0, %v688_v36, 0.0  ;;  %v3116_v36 = vpop.permute.xlu1 %622  ;;  %v728_v8 = vsel %vm304_vm0, %v689_v60, 0.0  ;;  %vm788_vm10 = vcmp.ge.s32.totalorder %v2576_v23, 0  ;;  %v943_v60 = vld [vmem:[%s3966_s2 + $0x58] sm:$0xff]  ;;  %v734_v23 = vsel %vm304_vm0, %v691_v28, 0.0 }
 0x104   :  { %v1413_v39 = vmul.f32 %v2127_v10, %v1163_v63 }
 0x105   :  { %717 = vadd.xlane.f32.xlu1 %v716_v1  ;;  %v989_v1 = vsub.f32 %v939_v34, %v964_v17  ;;  %v1660_v34 = vld [vmem:[#allocation4 + $0x8] sm:$0xff]  ;;  %v3112_v17 = vsub.f32 %v2484_v38, %v2705_v48  ;;  %v2053_v48 = vadd.f32 -0.5, %v1015_v56  ;;  %v944_v56 = vld [vmem:[%s3966_s2 + $0x60] sm:$0xff] }
 0x106   :  { %492 = vadd.xlane.f32.xlu0 %v491_v21  ;;  %v3089_v21 = vpop.permute.xlu0 %2130  ;;  %v1451_v38 = vsel %vm1432_vm14, %v1413_v39, 0.0 }
 0x107   :  { %v1014_v0 = vand.u32 2147483647, %v989_v1  ;;  %v1140_v1 = vmul.f32 0.5, %v1115_v25  ;;  %v441_v22 = vmul.f32 1.442695, %v3112_v17  ;;  %v2132_v63 = vunpack.i.l.bf16 %v3089_v21  ;;  %v3157_v49 = vpop.permute.xlu1 %625 }
 0x109   :  { %489 = vadd.xlane.f32.xlu1 %v488_v42  ;;  %v2198_v32 = vpop.eup %2197  ;;  %v1162_v42 = vsel %vm1062_vm13, %v2050_v52, %v1137_v55  ;;  %v1114_v44 = vmul.f32 %v1014_v0, %v1014_v0  ;;  %v1685_v52 = vadd.f32 %v3108_v7, %v1660_v34  ;;  %v690_v55 = vsel %vm665_vm1, %v2661_v46, 0.0 }
 0x10a   :  { %1446 = vadd.xlane.f32.xlu0 %v1445_v47  ;;  %v494_v3 = vsel %vm304_vm0, %v2198_v32, 0.0  ;;  %v1412_v14 = vmul.f32 %v2123_v27, %v1162_v42  ;;  %v942_v47 = vld [vmem:[%s3966_s2 + $0x50] sm:$0xff]  ;;  %v3114_v35 = vpop.permute.xlu0 %616  ;;  %v2052_v58 = vadd.f32 -0.5, %v1014_v0  ;;  %v731_v27 = vsel %vm304_vm0, %v690_v55, 0.0  ;;  %v2200_v42 = vpop.eup %2199  ;;  %v2272_v55 = vld [vmem:[%s3964_s0 + $0xa0] sm:$0xff] }
 0x10b   :  { %v992_v10 = vsub.f32 %v942_v47, %v967_v51  ;;  %1710 = vst.msk [vmem:[#allocation4 + $0x8] sm:$0xff] %vm25_vm3, %v1685_v52  ;;  %v1139_v46 = vmul.f32 0.5, %v1114_v44  ;;  %vm1064_vm7 = vcmp.ge.f32.partialorder %v1014_v0, 1.0  ;;  %v1663_v32 = vld [vmem:[#allocation4 + $0x20] sm:$0xff]  ;;  %v1165_v5 = vsel %vm1065_vm6, %v2053_v48, %v1140_v1  ;;  %v2202_v47 = vpop.eup %2201  ;;  %v969_v44 = vld [vmem:[%s3967_s3 + $0x60] sm:$0xff] }
 0x10c   :  { %2203 = vpow2.f32 %v441_v22  ;;  %v503_v0 = vsel %vm304_vm0, %v2200_v42, 0.0  ;;  %v500_v48 = vsel %vm304_vm0, %v2202_v47, 0.0  ;;  %v994_v57 = vsub.f32 %v944_v56, %v969_v44  ;;  %v2273_v22 = vld [vmem:[%s3965_s1 + $0x28] sm:$0xff]  ;;  %v1665_v56 = vld [vmem:[#allocation4 + $0x30] sm:$0xff] }
 0x10d   :  { %1443 = vadd.xlane.f32.xlu1 %v1442_v16  ;;  %v966_v16 = vld [vmem:[%s3967_s3 + $0x48] sm:$0xff]  ;;  %v3160_v25 = vand.u32 2147483647, %v992_v10  ;;  %v1164_v51 = vsel %vm1064_vm7, %v2052_v58, %v1139_v46  ;;  %v3192_v1 = vsub.f32 %v2272_v55, %v2715_v18  ;;  %vm787_vm9 = vcmp.ge.s32.totalorder %v2273_v22, 0  ;;  %v968_v58 = vld [vmem:[%s3967_s3 + $0x58] sm:$0xff] }
 0x10e   :  { %726 = vadd.xlane.f32.xlu0 %v725_v59  ;;  %v1448_v59 = vsel %vm1432_vm14, %v1412_v14, 0.0  ;;  %v991_v11 = vsub.f32 %v941_v33, %v966_v16  ;;  %v3155_v39 = vpop.permute.xlu0 %619  ;;  %v2128_v14 = vunpack.i.h.bf16 %v2991_v13  ;;  %v3178_v13 = vsel %vm785_vm5, 1.0, %v2322_v54  ;;  %v1662_v33 = vld [vmem:[#allocation4 + $0x18] sm:$0xff]  ;;  %v2274_v46 = vld [vmem:[%s3964_s0 + $0x98] sm:$0xff] }
 0x10f   :  { %v1415_v16 = vmul.f32 %v2132_v63, %v1165_v5  ;;  %v1687_v52 = vadd.f32 %v3178_v13, %v1662_v33  ;;  %v3217_v63 = vsub.f32 %v2274_v46, %v2675_v4  ;;  %vm1067_vm12 = vcmp.ge.f32.partialorder %v3160_v25, 1.0 }
 0x110   :  { %v3166_v34 = vand.u32 2147483647, %v991_v11  ;;  %v1414_v12 = vmul.f32 %v2128_v14, %v1164_v51  ;;  %v445_v4 = vmul.f32 1.442695, %v3192_v1  ;;  %v993_v14 = vsub.f32 %v943_v60, %v968_v58 }
 0x111   :  { %723 = vadd.xlane.f32.xlu1 %v722_v2  ;;  %v3152_v2 = vsel %vm786_vm2, 1.0, %v2322_v54  ;;  %1712 = vst.msk [vmem:[#allocation4 + $0x18] sm:$0xff] %vm25_vm3, %v1687_v52  ;;  %v1457_v18 = vsel %vm1432_vm14, %v1415_v16, 0.0  ;;  %v3240_v51 = vsel %vm788_vm10, 1.0, %v2322_v54  ;;  %v443_v33 = vmul.f32 1.442695, %v3217_v63 }
 0x112   :  { %498 = vadd.xlane.f32.xlu0 %v497_v43  ;;  %v439_v43 = vmul.f32 1.442695, %v3133_v29  ;;  %v3194_v10 = vpop.permute.xlu0 %2140  ;;  %v1116_v11 = vmul.f32 %v3166_v34, %v3166_v34  ;;  %v2054_v5 = vadd.f32 -0.5, %v3166_v34  ;;  %vm1066_vm13 = vcmp.ge.f32.partialorder %v3166_v34, 1.0 }
 0x113   :  { %v1690_v16 = vadd.f32 %v3240_v51, %v1665_v56  ;;  %v2133_v52 = vunpack.i.h.bf16 %v3089_v21  ;;  %v3262_v21 = vand.u32 2147483647, %v993_v14  ;;  %v3267_v55 = vsel %vm787_vm9, 1.0, %v2322_v54 }
 0x114   :  { %2205 = vpow2.f32 %v439_v43  ;;  %v1454_v43 = vsel %vm1432_vm14, %v1414_v12, 0.0  ;;  %v970_v12 = vld [vmem:[%s3967_s3 + $0x68] sm:$0xff]  ;;  %vm669_vm15 = vcmp.eq.s32.totalorder %v2717_v62, %v3155_v39  ;;  %vm668_vm4 = vcmp.eq.s32.totalorder %v2717_v62, %v3114_v35 }
 0x115   :  { %495 = vadd.xlane.f32.xlu1 %v494_v3  ;;  %v1688_v3 = vadd.f32 %v3152_v2, %v1663_v32  ;;  %v2055_v32 = vadd.f32 -0.5, %v3160_v25  ;;  %2207 = vpow2.f32 %v445_v4  ;;  %1715 = vst.msk [vmem:[#allocation4 + $0x30] sm:$0xff] %vm25_vm3, %v1690_v16  ;;  %v1118_v14 = vmul.f32 %v3262_v21, %v3262_v21 }
 0x116   :  { %1452 = vadd.xlane.f32.xlu0 %v1451_v38  ;;  %v1117_v38 = vmul.f32 %v3160_v25, %v3160_v25  ;;  %v2204_v44 = vpop.eup %2203  ;;  %2209 = vpow2.f32 %v443_v33  ;;  %v694_v35 = vsel %vm669_vm15, %v2758_v61, 0.0  ;;  %v2056_v16 = vadd.f32 -0.5, %v3262_v21 }
 0x117   :  { %1713 = vst.msk [vmem:[#allocation4 + $0x20] sm:$0xff] %vm25_vm3, %v1688_v3  ;;  %v3227_v3 = vand.u32 2147483647, %v994_v57  ;;  %vm1068_vm6 = vcmp.ge.f32.partialorder %v3262_v21, 1.0  ;;  %v743_v61 = vsel %vm304_vm0, %v694_v35, 0.0  ;;  %v2279_v35 = vld [vmem:[%s3964_s0 + $0xc0] sm:$0xff]  ;;  %vm671_vm7 = vcmp.eq.s32.totalorder %v2717_v62, %v3157_v49 }
 0x118   :  { %v1142_v42 = vmul.f32 0.5, %v1117_v38  ;;  %vm670_vm10 = vcmp.eq.s32.totalorder %v2717_v62, %v3116_v36 }
 0x119   :  { %1449 = vadd.xlane.f32.xlu1 %v1448_v59  ;;  %v3196_v59 = vpop.permute.xlu1 %2145  ;;  %v1119_v38 = vmul.f32 %v3227_v3, %v3227_v3  ;;  %v2057_v46 = vadd.f32 -0.5, %v3227_v3  ;;  %vm1069_vm1 = vcmp.ge.f32.partialorder %v3227_v3, 1.0  ;;  %v2278_v3 = vld [vmem:[%s3964_s0 + $0xa8] sm:$0xff] }
 0x11a   :  { %732 = vadd.xlane.f32.xlu0 %v731_v27  ;;  %v692_v27 = vsel %vm667_vm8, %v2726_v6, 0.0  ;;  %v1141_v6 = vmul.f32 0.5, %v1116_v11  ;;  %v1167_v15 = vsel %vm1067_vm12, %v2055_v32, %v1142_v42  ;;  %v1664_v11 = vld [vmem:[#allocation4 + $0x28] sm:$0xff]  ;;  %v946_v42 = vld [vmem:[%s3966_s2 + $0x70] sm:$0xff]  ;;  %v3308_v56 = vsub.f32 %v2278_v3, %v2680_v20 }
 0x11b   :  { %v737_v47 = vsel %vm304_vm0, %v692_v27, 0.0  ;;  %v1689_v58 = vadd.f32 %v3267_v55, %v1664_v11  ;;  %v1144_v22 = vmul.f32 0.5, %v1119_v38  ;;  %v693_v20 = vsel %vm668_vm4, %v2777_v26, 0.0 }
 0x11c   :  { %v1166_v25 = vsel %vm1066_vm13, %v2054_v5, %v1141_v6  ;;  %v2275_v5 = vld [vmem:[%s3964_s0 + $0xb0] sm:$0xff]  ;;  %v1143_v38 = vmul.f32 0.5, %v1118_v14  ;;  %v447_v26 = vmul.f32 1.442695, %v3308_v56 }
 0x11d   :  { %729 = vadd.xlane.f32.xlu1 %v728_v8  ;;  %v2137_v8 = vunpack.i.l.bf16 %v3091_v30  ;;  %v3245_v37 = vpop.permute.xlu1 %634  ;;  %v1416_v32 = vmul.f32 %v2133_v52, %v1166_v25  ;;  %1714 = vst.msk [vmem:[#allocation4 + $0x28] sm:$0xff] %vm25_vm3, %v1689_v58  ;;  %v3286_v4 = vsub.f32 %v2275_v5, %v2736_v19  ;;  %v1666_v25 = vld [vmem:[#allocation4 + $0x38] sm:$0xff] }
 0x11e   :  { %504 = vadd.xlane.f32.xlu0 %v503_v0  ;;  %v3243_v0 = vpop.permute.xlu0 %628  ;;  %v2206_v57 = vpop.eup %2205  ;;  %v1168_v5 = vsel %vm1068_vm6, %v2056_v16, %v1143_v38  ;;  %v2280_v16 = vld [vmem:[%s3965_s1 + $0x50] sm:$0xff] }
 0x11f   :  { %v1417_v60 = vmul.f32 %v2137_v8, %v1167_v15  ;;  %v506_v27 = vsel %vm304_vm0, %v2206_v57, 0.0  ;;  %v2276_v8 = vld [vmem:[%s3965_s1 + $0x38] sm:$0xff]  ;;  %v1460_v33 = vsel %vm1432_vm14, %v1416_v32, 0.0  ;;  %v1169_v15 = vsel %vm1069_vm1, %v2057_v46, %v1144_v22  ;;  %v2208_v11 = vpop.eup %2207  ;;  %v948_v22 = vld [vmem:[%s3966_s2 + $0x80] sm:$0xff] }
 0x120   :  { %vm789_vm2 = vcmp.ge.s32.totalorder %v2276_v8, 0  ;;  %v740_v32 = vsel %vm304_vm0, %v693_v20, 0.0  ;;  %vm792_vm8 = vcmp.ge.s32.totalorder %v2280_v16, 0 }
 0x121   :  { %501 = vadd.xlane.f32.xlu1 %v500_v48  ;;  %v945_v48 = vld [vmem:[%s3966_s2 + $0x68] sm:$0xff]  ;;  %v3290_v6 = vpop.permute.xlu1 %637  ;;  %v1463_v19 = vsel %vm1432_vm14, %v1417_v60, 0.0  ;;  %v3329_v57 = vsel %vm789_vm2, 1.0, %v2322_v54  ;;  %v3417_v49 = vsel %vm792_vm8, 1.0, %v2322_v54  ;;  %vm672_vm2 = vcmp.eq.s32.totalorder %v2717_v62, %v3243_v0 }
 0x122   :  { %1458 = vadd.xlane.f32.xlu0 %v1457_v18  ;;  %v509_v18 = vsel %vm304_vm0, %v2204_v44, 0.0  ;;  %v995_v34 = vsub.f32 %v945_v48, %v970_v12  ;;  %v3288_v28 = vpop.permute.xlu0 %631  ;;  %v2142_v48 = vunpack.i.l.bf16 %v3194_v10  ;;  %v1667_v12 = vld [vmem:[#allocation4 + $0x40] sm:$0xff] }
 0x123   :  { %vm673_vm1 = vcmp.eq.s32.totalorder %v2717_v62, %v3288_v28  ;;  %v978_v28 = vld [vmem:[%s3967_s3 + $0xa8] sm:$0xff] }
 0x124   :  { %v3316_v52 = vand.u32 2147483647, %v995_v34  ;;  %v1691_v34 = vadd.f32 %v3329_v57, %v1666_v25  ;;  %v1419_v14 = vmul.f32 %v2142_v48, %v1169_v15  ;;  %v972_v25 = vld [vmem:[%s3967_s3 + $0x78] sm:$0xff] }
 0x125   :  { %1455 = vadd.xlane.f32.xlu1 %v1454_v43  ;;  %v971_v43 = vld [vmem:[%s3967_s3 + $0x70] sm:$0xff]  ;;  %v3334_v60 = vpop.permute.xlu1 %2155 }
 0x126   :  { %738 = vadd.xlane.f32.xlu0 %v737_v47  ;;  %v2277_v47 = vld [vmem:[%s3965_s1 + $0x40] sm:$0xff]  ;;  %v996_v44 = vsub.f32 %v946_v42, %v971_v43  ;;  %v2210_v43 = vpop.eup %2209  ;;  %1716 = vst.msk [vmem:[#allocation4 + $0x38] sm:$0xff] %vm25_vm3, %v1691_v34  ;;  %v1120_v8 = vmul.f32 %v3316_v52, %v3316_v52  ;;  %vm1070_vm9 = vcmp.ge.f32.partialorder %v3316_v52, 1.0  ;;  %v1469_v48 = vsel %vm1432_vm14, %v1419_v14, 0.0 }
 0x127   :  { %vm790_vm5 = vcmp.ge.s32.totalorder %v2277_v47, 0  ;;  %v973_v42 = vld [vmem:[%s3967_s3 + $0x80] sm:$0xff]  ;;  %v974_v47 = vld [vmem:[%s3967_s3 + $0x88] sm:$0xff]  ;;  %v696_v34 = vsel %vm671_vm7, %v2989_v40, 0.0 }
 0x128   :  { %v3325_v39 = vsel %vm790_vm5, 1.0, %v2322_v54  ;;  %v3336_v58 = vand.u32 2147483647, %v996_v44  ;;  %v998_v3 = vsub.f32 %v948_v22, %v973_v42  ;;  %v3367_v44 = vsub.f32 %v2279_v35, %v2744_v45 }
 0x129   :  { %735 = vadd.xlane.f32.xlu1 %v734_v23  ;;  %v449_v23 = vmul.f32 1.442695, %v3286_v4  ;;  %v1692_v46 = vadd.f32 %v3325_v39, %v1667_v12  ;;  %v3377_v20 = vpop.permute.xlu1 %646  ;;  %v2058_v45 = vadd.f32 -0.5, %v3316_v52  ;;  %v947_v12 = vld [vmem:[%s3966_s2 + $0x78] sm:$0xff] }
 0x12a   :  { %510 = vadd.xlane.f32.xlu0 %v509_v18  ;;  %v3332_v18 = vpop.permute.xlu0 %2150  ;;  %v1121_v21 = vmul.f32 %v3336_v58, %v3336_v58  ;;  %v453_v22 = vmul.f32 1.442695, %v3367_v44  ;;  %vm1071_vm12 = vcmp.ge.f32.partialorder %v3336_v58, 1.0  ;;  %v997_v40 = vsub.f32 %v947_v12, %v972_v25  ;;  %v950_v12 = vld [vmem:[%s3966_s2 + $0x90] sm:$0xff]  ;;  %v2283_v52 = vld [vmem:[%s3965_s1 + $0x58] sm:$0xff] }
 0x12b   :  { %2211 = vpow2.f32 %v449_v23  ;;  %1717 = vst.msk [vmem:[#allocation4 + $0x40] sm:$0xff] %vm25_vm3, %v1692_v46  ;;  %v975_v25 = vld [vmem:[%s3967_s3 + $0x90] sm:$0xff]  ;;  %vm793_vm13 = vcmp.ge.s32.totalorder %v2283_v52, 0  ;;  %v697_v52 = vsel %vm672_vm2, %v3073_v53, 0.0 }
 0x12c   :  { %2213 = vpow2.f32 %v447_v26  ;;  %v2282_v26 = vld [vmem:[%s3964_s0 + $0xb8] sm:$0xff] }
 0x12d   :  { %507 = vadd.xlane.f32.xlu1 %v506_v27  ;;  %v2138_v27 = vunpack.i.h.bf16 %v3091_v30  ;;  %v515_v30 = vsel %vm304_vm0, %v2208_v11, 0.0  ;;  %v2281_v11 = vld [vmem:[%s3965_s1 + $0x48] sm:$0xff]  ;;  %v3397_v46 = vsub.f32 %v2282_v26, %v2683_v31  ;;  %v695_v31 = vsel %vm670_vm10, %v3006_v41, 0.0 }
 0x12e   :  { %1464 = vadd.xlane.f32.xlu0 %v1463_v19  ;;  %v949_v19 = vld [vmem:[%s3966_s2 + $0x88] sm:$0xff]  ;;  %v3375_v23 = vpop.permute.xlu0 %640  ;;  %vm791_vm11 = vcmp.ge.s32.totalorder %v2281_v11, 0  ;;  %v746_v16 = vsel %vm304_vm0, %v695_v31, 0.0  ;;  %2215 = vpow2.f32 %v453_v22  ;;  %v3450_v26 = vand.u32 2147483647, %v997_v40  ;;  %v976_v22 = vld [vmem:[%s3967_s3 + $0x98] sm:$0xff] }
 0x12f   :  { %v1418_v15 = vmul.f32 %v2138_v27, %v1168_v5  ;;  %v999_v38 = vsub.f32 %v949_v19, %v974_v47  ;;  %v2059_v27 = vadd.f32 -0.5, %v3336_v58  ;;  %v3421_v14 = vsel %vm791_vm11, 1.0, %v2322_v54 }
 0x130   :  { %v2147_v19 = vunpack.i.l.bf16 %v3196_v59  ;;  %v749_v47 = vsel %vm304_vm0, %v696_v34, 0.0  ;;  %vm1072_vm5 = vcmp.ge.f32.partialorder %v3450_v26, 1.0  ;;  %vm674_vm10 = vcmp.eq.s32.totalorder %v2717_v62, %v3245_v37 }
 0x131   :  { %1461 = vadd.xlane.f32.xlu1 %v1460_v33  ;;  %v512_v33 = vsel %vm304_vm0, %v2210_v43, 0.0  ;;  %v1466_v42 = vsel %vm1432_vm14, %v1418_v15, 0.0  ;;  %v3407_v43 = vand.u32 2147483647, %v998_v3  ;;  %v451_v3 = vmul.f32 1.442695, %v3397_v46 }
 0x132   :  { %744 = vadd.xlane.f32.xlu0 %v743_v61  ;;  %v1145_v61 = vmul.f32 0.5, %v1120_v8  ;;  %v1668_v8 = vld [vmem:[#allocation4 + $0x48] sm:$0xff]  ;;  %v3428_v35 = vpop.permute.xlu0 %643  ;;  %v2143_v15 = vunpack.i.h.bf16 %v3194_v10 }
 0x133   :  { %v1693_v36 = vadd.f32 %v3421_v14, %v1668_v8  ;;  %2217 = vpow2.f32 %v451_v3  ;;  %v2061_v8 = vadd.f32 -0.5, %v3407_v43  ;;  %vm1073_vm4 = vcmp.ge.f32.partialorder %v3407_v43, 1.0 }
 0x134   :  { %v1170_v10 = vsel %vm1070_vm9, %v2058_v45, %v1145_v61  ;;  %v2284_v45 = vld [vmem:[%s3965_s1 + $0x60] sm:$0xff]  ;;  %v1000_v61 = vsub.f32 %v950_v12, %v975_v25  ;;  %v698_v12 = vsel %vm673_vm1, %v3050_v50, 0.0  ;;  %v953_v50 = vld [vmem:[%s3966_s2 + $0xa8] sm:$0xff]  ;;  %vm676_vm1 = vcmp.eq.s32.totalorder %v2717_v62, %v3375_v23  ;;  %v2288_v23 = vld [vmem:[%s3965_s1 + $0x78] sm:$0xff] }
 0x135   :  { %741 = vadd.xlane.f32.xlu1 %v740_v32  ;;  %v1146_v32 = vmul.f32 0.5, %v1121_v21  ;;  %v2212_v21 = vpop.eup %2211  ;;  %1718 = vst.msk [vmem:[#allocation4 + $0x48] sm:$0xff] %vm25_vm3, %v1693_v36  ;;  %vm794_vm15 = vcmp.ge.s32.totalorder %v2284_v45, 0  ;;  %v1420_v31 = vmul.f32 %v2143_v15, %v1170_v10  ;;  %v952_v36 = vld [vmem:[%s3966_s2 + $0xa0] sm:$0xff] }
 0x136   :  { %516 = vadd.xlane.f32.xlu0 %v515_v30  ;;  %v1669_v30 = vld [vmem:[#allocation4 + $0x50] sm:$0xff]  ;;  %v2214_v58 = vpop.eup %2213  ;;  %v521_v34 = vsel %vm304_vm0, %v2212_v21, 0.0  ;;  %v3487_v15 = vsel %vm794_vm15, 1.0, %v2322_v54 }
 0x137   :  { %v1694_v41 = vadd.f32 %v3417_v49, %v1669_v30  ;;  %v3470_v30 = vpop.permute.xlu0 %2160  ;;  %v977_v21 = vld [vmem:[%s3967_s3 + $0xa0] sm:$0xff] }
 0x138   :  { %v2216_v53 = vpop.eup %2215 }
 0x139   :  { %513 = vadd.xlane.f32.xlu1 %v512_v33  ;;  %v1171_v33 = vsel %vm1071_vm12, %v2059_v27, %v1146_v32  ;;  %1719 = vst.msk [vmem:[#allocation4 + $0x50] sm:$0xff] %vm25_vm3, %v1694_v41  ;;  %v951_v32 = vld [vmem:[%s3966_s2 + $0x98] sm:$0xff]  ;;  %vm675_vm12 = vcmp.eq.s32.totalorder %v2717_v62, %v3290_v6 }
 0x13a   :  { %1470 = vadd.xlane.f32.xlu0 %v1469_v48  ;;  %v3434_v48 = vand.u32 2147483647, %v999_v38  ;;  %v1123_v38 = vmul.f32 %v3407_v43, %v3407_v43  ;;  %v1421_v27 = vmul.f32 %v2147_v19, %v1171_v33  ;;  %v1001_v41 = vsub.f32 %v951_v32, %v976_v22 }
 0x13b   :  { %v1002_v32 = vsub.f32 %v952_v36, %v977_v21  ;;  %v3515_v45 = vpop.xlane.xlu0 %459  ;;  %v2152_v36 = vunpack.i.l.bf16 %v3332_v18  ;;  %v755_v21 = vsel %vm304_vm0, %v698_v12, 0.0  ;;  %v752_v12 = vsel %vm304_vm0, %v697_v52, 0.0 }
 0x13c   :  { %v1124_v40 = vmul.f32 %v3434_v48, %v3434_v48  ;;  %v1148_v19 = vmul.f32 0.5, %v1123_v38  ;;  %v1475_v3 = vsel %vm1432_vm14, %v1421_v27, 0.0  ;;  %v2062_v33 = vadd.f32 -0.5, %v3434_v48 }
 0x13d   :  { %v3413_v5 = vpop.xlane.xlu1 %456  ;;  %1467 = vadd.xlane.f32.xlu1 %v1466_v42  ;;  %v518_v42 = vsel %vm304_vm0, %v2214_v58, 0.0  ;;  %v3495_v58 = vand.u32 2147483647, %v1000_v61  ;;  %v3500_v38 = vsel %vm793_vm13, 1.0, %v2322_v54  ;;  %v1472_v27 = vsel %vm1432_vm14, %v1420_v31, 0.0 }
 0x13e   :  { %750 = vadd.xlane.f32.xlu0 %v749_v47  ;;  %v1122_v47 = vmul.f32 %v3450_v26, %v3450_v26  ;;  %v2060_v61 = vadd.f32 -0.5, %v3450_v26  ;;  %v3518_v31 = vand.u32 2147483647, %v1001_v41  ;;  %v1173_v0 = vsel %vm1073_vm4, %v2061_v8, %v1148_v19 }
 0x13f   :  { %vm1074_vm6 = vcmp.ge.f32.partialorder %v3434_v48, 1.0  ;;  %v1003_v41 = vsub.f32 %v953_v50, %v978_v28  ;;  %v2153_v26 = vunpack.i.h.bf16 %v3332_v18  ;;  %v3537_v8 = vand.u32 2147483647, %v1002_v32  ;;  %v3543_v50 = vpop.xlane.xlu0 %465 }
 0x140   :  { %v1126_v43 = vmul.f32 %v3518_v31, %v3518_v31  ;;  %v527_v48 = vsel %vm304_vm0, %v2216_v53, 0.0  ;;  %v1423_v19 = vmul.f32 %v2152_v36, %v1173_v0  ;;  %v2063_v18 = vadd.f32 -0.5, %v3495_v58 }
 0x141   :  { %v3444_v11 = vpop.xlane.xlu1 %462  ;;  %747 = vadd.xlane.f32.xlu1 %v746_v16  ;;  %v1671_v16 = vld [vmem:[#allocation4 + $0x60] sm:$0xff]  ;;  %vm1075_vm8 = vcmp.ge.f32.partialorder %v3495_v58, 1.0  ;;  %v1127_v53 = vmul.f32 %v3537_v8, %v3537_v8  ;;  %v2157_v0 = vunpack.i.l.bf16 %v3334_v60  ;;  %vm1076_vm11 = vcmp.ge.f32.partialorder %v3518_v31, 1.0 }
 0x142   :  { %522 = vadd.xlane.f32.xlu0 %v521_v34  ;;  %v1696_v10 = vadd.f32 %v3487_v15, %v1671_v16  ;;  %v1670_v34 = vld [vmem:[#allocation4 + $0x58] sm:$0xff]  ;;  %v2148_v16 = vunpack.i.h.bf16 %v3196_v59  ;;  %v2285_v59 = vld [vmem:[%s3965_s1 + $0x70] sm:$0xff]  ;;  %vm1077_vm13 = vcmp.ge.f32.partialorder %v3537_v8, 1.0  ;;  %v700_v6 = vsel %vm675_vm12, %v3112_v17, 0.0  ;;  %v2287_v17 = vld [vmem:[%s3965_s1 + $0x80] sm:$0xff] }
 0x143   :  { %v1695_v22 = vadd.f32 %v3500_v38, %v1670_v34  ;;  %vm796_vm7 = vcmp.ge.s32.totalorder %v2285_v59, 0  ;;  %v1152_v37 = vmul.f32 0.5, %v1127_v53  ;;  %vm798_vm2 = vcmp.ge.s32.totalorder %v2287_v17, 0 }
 0x144   :  { %1721 = vst.msk [vmem:[#allocation4 + $0x60] sm:$0xff] %vm25_vm3, %v1696_v10  ;;  %v2218_v10 = vpop.eup %2217  ;;  %vm797_vm4 = vcmp.ge.s32.totalorder %v2288_v23, 0  ;;  %2219 = vlog2.f32 %v3413_v5 }
 0x145   :  { %519 = vadd.xlane.f32.xlu1 %v518_v42  ;;  %v3493_v25 = vpop.xlane.xlu1 %468  ;;  %v1147_v42 = vmul.f32 0.5, %v1122_v47  ;;  %1720 = vst.msk [vmem:[#allocation4 + $0x58] sm:$0xff] %vm25_vm3, %v1695_v22  ;;  %v1125_v47 = vmul.f32 %v3495_v58, %v3495_v58  ;;  %v3546_v22 = vand.u32 2147483647, %v1003_v41  ;;  %v524_v32 = vsel %vm304_vm0, %v2218_v10, 0.0  ;;  %v980_v58 = vld [vmem:[%s3967_s3 + $0xb8] sm:$0xff] }
 0x146   :  { %1476 = vadd.xlane.f32.xlu0 %v1475_v3  ;;  %v1149_v3 = vmul.f32 0.5, %v1124_v40  ;;  %v3568_v41 = vsel %vm796_vm7, 1.0, %v2322_v54  ;;  %vm678_vm7 = vcmp.eq.s32.totalorder %v2717_v62, %v3377_v20  ;;  %2221 = vlog2.f32 %v3444_v11 }
 0x147   :  { %v1172_v34 = vsel %vm1072_vm5, %v2060_v61, %v1147_v42  ;;  %v1150_v28 = vmul.f32 0.5, %v1125_v47  ;;  %v979_v61 = vld [vmem:[%s3967_s3 + $0xb0] sm:$0xff]  ;;  %v2286_v42 = vld [vmem:[%s3965_s1 + $0x68] sm:$0xff]  ;;  %v1481_v47 = vsel %vm1432_vm14, %v1423_v19, 0.0  ;;  %vm1078_vm15 = vcmp.ge.f32.partialorder %v3546_v22, 1.0 }
 0x148   :  { %v1422_v52 = vmul.f32 %v2148_v16, %v1172_v34  ;;  %vm795_vm9 = vcmp.ge.s32.totalorder %v2286_v42, 0  ;;  %v1673_v16 = vld [vmem:[#allocation4 + $0x70] sm:$0xff]  ;;  %vm677_vm5 = vcmp.eq.s32.totalorder %v2717_v62, %v3428_v35  ;;  %2223 = vlog2.f32 %v3515_v45  ;;  %v2294_v45 = vld [vmem:[%s3965_s1 + $0xb0] sm:$0xff] }
 0x149   :  { %1473 = vadd.xlane.f32.xlu1 %v1472_v27  ;;  %v3533_v40 = vpop.xlane.xlu1 %474  ;;  %v1174_v27 = vsel %vm1074_vm6, %v2062_v33, %v1149_v3  ;;  %v954_v33 = vld [vmem:[%s3966_s2 + $0xb0] sm:$0xff]  ;;  %v1151_v3 = vmul.f32 0.5, %v1126_v43  ;;  %v1175_v10 = vsel %vm1075_vm8, %v2063_v18, %v1150_v28  ;;  %v1698_v34 = vadd.f32 %v3568_v41, %v1673_v16  ;;  %v3592_v28 = vpop.xlane.xlu0 %471 }
 0x14a   :  { %756 = vadd.xlane.f32.xlu0 %v755_v21  ;;  %v1424_v36 = vmul.f32 %v2153_v26, %v1174_v27  ;;  %v2064_v21 = vadd.f32 -0.5, %v3518_v31  ;;  %v1004_v26 = vsub.f32 %v954_v33, %v979_v61  ;;  %v3577_v43 = vsel %vm795_vm9, 1.0, %v2322_v54  ;;  %v955_v27 = vld [vmem:[%s3966_s2 + $0xb8] sm:$0xff] }
 0x14b   :  { %v1478_v19 = vsel %vm1432_vm14, %v1422_v52, 0.0  ;;  %v699_v18 = vsel %vm674_vm10, %v3133_v29, 0.0  ;;  %v1128_v52 = vmul.f32 %v3546_v22, %v3546_v22  ;;  %1723 = vst.msk [vmem:[#allocation4 + $0x70] sm:$0xff] %vm25_vm3, %v1698_v34  ;;  %v2158_v33 = vunpack.i.h.bf16 %v3334_v60 }
 0x14c   :  { %v1484_v61 = vsel %vm1432_vm14, %v1424_v36, 0.0  ;;  %v1425_v42 = vmul.f32 %v2157_v0, %v1175_v10  ;;  %v1176_v29 = vsel %vm1076_vm11, %v2064_v21, %v1151_v3  ;;  %v1005_v16 = vsub.f32 %v955_v27, %v980_v58 }
 0x14d   :  { %753 = vadd.xlane.f32.xlu1 %v752_v12  ;;  %v3570_v12 = vpop.xlane.xlu1 %480  ;;  %v2066_v60 = vadd.f32 -0.5, %v3546_v22  ;;  %v1153_v36 = vmul.f32 0.5, %v1128_v52  ;;  %v2162_v31 = vunpack.i.l.bf16 %v3470_v30  ;;  %v1426_v3 = vmul.f32 %v2158_v33, %v1176_v29  ;;  %v1675_v22 = vld [vmem:[#allocation4 + $0x80] sm:$0xff] }
 0x14e   :  { %528 = vadd.xlane.f32.xlu0 %v527_v48  ;;  %v1672_v48 = vld [vmem:[#allocation4 + $0x68] sm:$0xff]  ;;  %v1487_v21 = vsel %vm1432_vm14, %v1425_v42, 0.0  ;;  %v1030_v10 = vand.u32 2147483647, %v1005_v16  ;;  %v3640_v33 = vsel %vm798_vm2, 1.0, %v2322_v54  ;;  %v1674_v16 = vld [vmem:[#allocation4 + $0x78] sm:$0xff]  ;;  %2225 = vlog2.f32 %v3493_v25 }
 0x14f   :  { %v1697_v59 = vadd.f32 %v3577_v43, %v1672_v48  ;;  %v758_v48 = vsel %vm304_vm0, %v699_v18, 0.0  ;;  %v1178_v27 = vsel %vm1078_vm15, %v2066_v60, %v1153_v36  ;;  %v956_v18 = vld [vmem:[%s3966_s2 + $0xc0] sm:$0xff]  ;;  %v1700_v29 = vadd.f32 %v3640_v33, %v1675_v22  ;;  %v1676_v22 = vld [vmem:[#allocation4 + $0x88] sm:$0xff] }
 0x150   :  { %v702_v60 = vsel %vm677_vm5, %v3192_v1, 0.0  ;;  %vm1080_vm8 = vcmp.ge.f32.partialorder %v1030_v10, 1.0  ;;  %2227 = vlog2.f32 %v3543_v50  ;;  %v2296_v50 = vld [vmem:[%s3965_s1 + $0xc0] sm:$0xff] }
 0x151   :  { %525 = vadd.xlane.f32.xlu1 %v524_v32  ;;  %v2065_v32 = vadd.f32 -0.5, %v3537_v8  ;;  %1722 = vst.msk [vmem:[#allocation4 + $0x68] sm:$0xff] %vm25_vm3, %v1697_v59  ;;  %v3608_v34 = vpop.permute.xlu1 %649  ;;  %v3619_v8 = vpop.xlane.xlu0 %477  ;;  %v2163_v59 = vunpack.i.h.bf16 %v3470_v30  ;;  %v1130_v30 = vmul.f32 %v1030_v10, %v1030_v10  ;;  %1725 = vst.msk [vmem:[#allocation4 + $0x80] sm:$0xff] %vm25_vm3, %v1700_v29  ;;  %v767_v1 = vsel %vm304_vm0, %v702_v60, 0.0 }
 0x152   :  { %1482 = vadd.xlane.f32.xlu0 %v1481_v47  ;;  %v1029_v47 = vand.u32 2147483647, %v1004_v26  ;;  %v761_v26 = vsel %vm304_vm0, %v700_v6, 0.0  ;;  %vm679_vm9 = vcmp.eq.s32.totalorder %v2717_v62, %v3608_v34  ;;  %vm806_vm5 = vcmp.ge.s32.totalorder %v2296_v50, 0 }
 0x153   :  { %v1177_v53 = vsel %vm1077_vm13, %v2065_v32, %v1152_v37  ;;  %v981_v32 = vld [vmem:[%s3967_s3 + $0xc0] sm:$0xff]  ;;  %v3645_v37 = vsel %vm797_vm4, 1.0, %v2322_v54  ;;  %v1155_v35 = vmul.f32 0.5, %v1130_v30  ;;  %2229 = vlog2.f32 %v3533_v40 }
 0x154   :  { %v1129_v0 = vmul.f32 %v1029_v47, %v1029_v47  ;;  %v2067_v58 = vadd.f32 -0.5, %v1029_v47  ;;  %v1427_v52 = vmul.f32 %v2162_v31, %v1177_v53  ;;  %vm1079_vm6 = vcmp.ge.f32.partialorder %v1029_v47, 1.0 }
 0x155   :  { %1479 = vadd.xlane.f32.xlu1 %v1478_v19  ;;  %v701_v19 = vsel %vm676_vm1, %v3217_v63, 0.0  ;;  %v1490_v63 = vsel %vm1432_vm14, %v1426_v3, 0.0  ;;  %v1699_v6 = vadd.f32 %v3645_v37, %v1674_v16  ;;  %v3653_v36 = vpop.xlane.xlu0 %483  ;;  %v1006_v31 = vsub.f32 %v956_v18, %v981_v32 }
 0x156   :  { %1485 = vadd.xlane.f32.xlu0 %v1484_v61  ;;  %v2166_v61 = vpop.permute.xlu1 %2165  ;;  %v1154_v42 = vmul.f32 0.5, %v1129_v0  ;;  %v1493_v3 = vsel %vm1432_vm14, %v1427_v52, 0.0  ;;  %v1428_v47 = vmul.f32 %v2163_v59, %v1178_v27  ;;  %v2068_v53 = vadd.f32 -0.5, %v1030_v10  ;;  %v2289_v10 = vld [vmem:[%s3965_s1 + $0x88] sm:$0xff] }
 0x157   :  { %1724 = vst.msk [vmem:[#allocation4 + $0x78] sm:$0xff] %vm25_vm3, %v1699_v6  ;;  %v703_v0 = vsel %vm678_vm7, %v3308_v56, 0.0  ;;  %v2168_v20 = vunpack.i.h.bf16 %v2166_v61  ;;  %vm799_vm10 = vcmp.ge.s32.totalorder %v2289_v10, 0  ;;  %v704_v56 = vsel %vm679_vm9, %v3286_v4, 0.0  ;;  %v1677_v6 = vld [vmem:[#allocation4 + $0x90] sm:$0xff] }
 0x158   :  { %v1179_v17 = vsel %vm1079_vm6, %v2067_v58, %v1154_v42  ;;  %v1180_v59 = vsel %vm1080_vm8, %v2068_v53, %v1155_v35  ;;  %v770_v58 = vsel %vm304_vm0, %v703_v0, 0.0  ;;  %v3674_v52 = vsel %vm799_vm10, 1.0, %v2322_v54  ;;  %v2292_v53 = vld [vmem:[%s3965_s1 + $0xa0] sm:$0xff] }
 0x159   :  { %759 = vadd.xlane.f32.xlu1 %v758_v48  ;;  %v764_v48 = vsel %vm304_vm0, %v701_v19, 0.0  ;;  %v653_v23 = vpop.permute.xlu0 %652  ;;  %v1496_v19 = vsel %vm1432_vm14, %v1428_v47, 0.0  ;;  %v1430_v32 = vmul.f32 %v2168_v20, %v1180_v59  ;;  %v773_v4 = vsel %vm304_vm0, %v704_v56, 0.0  ;;  %v1678_v47 = vld [vmem:[#allocation4 + $0x98] sm:$0xff] }
 0x15a   :  { %1488 = vadd.xlane.f32.xlu0 %v1487_v21  ;;  %v2167_v21 = vunpack.i.l.bf16 %v2166_v61  ;;  %vm680_vm11 = vcmp.eq.s32.totalorder %v2717_v62, %v653_v23  ;;  %v2290_v61 = vld [vmem:[%s3965_s1 + $0x90] sm:$0xff]  ;;  %v1701_v5 = vadd.f32 %v3674_v52, %v1676_v22  ;;  %vm802_vm2 = vcmp.ge.s32.totalorder %v2292_v53, 0  ;;  %v2293_v59 = vld [vmem:[%s3965_s1 + $0xa8] sm:$0xff] }
 0x15b   :  { %vm800_vm12 = vcmp.ge.s32.totalorder %v2290_v61, 0  ;;  %v705_v42 = vsel %vm680_vm11, %v3397_v46, 0.0  ;;  %v1502_v16 = vsel %vm1432_vm14, %v1430_v32, 0.0  ;;  %v2291_v46 = vld [vmem:[%s3965_s1 + $0x98] sm:$0xff]  ;;  %v3706_v23 = vsel %vm802_vm2, 1.0, %v2322_v54  ;;  %v1508_v32 = vld [vmem:[#allocation2] sm:$0xff] }
 0x15c   :  { %v1429_v27 = vmul.f32 %v2167_v21, %v1179_v17  ;;  %1726 = vst.msk [vmem:[#allocation4 + $0x88] sm:$0xff] %vm25_vm3, %v1701_v5  ;;  %vm801_vm1 = vcmp.ge.s32.totalorder %v2291_v46, 0  ;;  %v776_v60 = vsel %vm304_vm0, %v705_v42, 0.0  ;;  %v1405_v21 = vpop.permute.xlu1 %1404  ;;  %v2220_v17 = vpop.eup %2219  ;;  %v1681_v5 = vld [vmem:[#allocation4 + $0xb0] sm:$0xff]  ;;  %v2295_v42 = vld [vmem:[%s3965_s1 + $0xb8] sm:$0xff]  ;;  %v1683_v53 = vld [vmem:[#allocation4 + $0xc0] sm:$0xff]  ;;  %2231 = vlog2.f32 %v3592_v28 }
 0x15d   :  { %762 = vadd.xlane.f32.xlu1 %v761_v26  ;;  %v1031_v26 = vand.u32 2147483647, %v1006_v31  ;;  %v531_v0 = vmul.f32 0.6931472, %v2220_v17  ;;  %v2222_v20 = vpop.eup %2221  ;;  %vm805_vm4 = vcmp.ge.s32.totalorder %v2295_v42, 0  ;;  %v3747_v17 = vsel %vm806_vm5, 1.0, %v2322_v54 }
 0x15e   :  { %1491 = vadd.xlane.f32.xlu0 %v1490_v63  ;;  %v1499_v34 = vsel %vm1432_vm14, %v1429_v27, 0.0  ;;  %v656_v63 = vpop.permute.xlu0 %655  ;;  %2233 = vlog2.f32 %v3570_v12 }
 0x15f   :  { %v1131_v18 = vmul.f32 %v1031_v26, %v1031_v26  ;;  %v2069_v30 = vadd.f32 -0.5, %v1031_v26  ;;  %vm681_vm13 = vcmp.eq.s32.totalorder %v2717_v62, %v656_v63  ;;  %vm1081_vm15 = vcmp.ge.f32.partialorder %v1031_v26, 1.0  ;;  %v1679_v26 = vld [vmem:[#allocation4 + $0xa0] sm:$0xff] }
 0x160   :  { %v706_v62 = vsel %vm681_vm13, %v3367_v44, 0.0  ;;  %v1704_v27 = vadd.f32 %v3706_v23, %v1679_v26  ;;  %v882_v10 = vmul.f32 %v3022_v9, %v531_v0  ;;  %2235 = vlog2.f32 %v3619_v8 }
 0x161   :  { %765 = vadd.xlane.f32.xlu1 %v764_v48  ;;  %v1156_v29 = vmul.f32 0.5, %v1131_v18  ;;  %v3687_v48 = vsel %vm800_vm12, 1.0, %v2322_v54  ;;  %v1680_v18 = vld [vmem:[#allocation4 + $0xa8] sm:$0xff] }
 0x162   :  { %1494 = vadd.xlane.f32.xlu0 %v1493_v3  ;;  %v1702_v11 = vadd.f32 %v3687_v48, %v1677_v6  ;;  %v3697_v3 = vsel %vm801_vm1, 1.0, %v2322_v54  ;;  %1729 = vst.msk [vmem:[#allocation4 + $0xa0] sm:$0xff] %vm25_vm3, %v1704_v27  ;;  %v2224_v6 = vpop.eup %2223  ;;  %v1586_v27 = vld [vmem:[#allocation3 + $0x10] sm:$0xff] }
 0x163   :  { %v1181_v31 = vsel %vm1081_vm15, %v2069_v30, %v1156_v29  ;;  %v1703_v44 = vadd.f32 %v3697_v3, %v1678_v47  ;;  %v1510_v29 = vld [vmem:[#allocation2 + $0x10] sm:$0xff] }
 0x164   :  { %1727 = vst.msk [vmem:[#allocation4 + $0x90] sm:$0xff] %vm25_vm3, %v1702_v11  ;;  %v1431_v35 = vmul.f32 %v1405_v21, %v1181_v31  ;;  %v1682_v11 = vld [vmem:[#allocation4 + $0xb8] sm:$0xff]  ;;  %v533_v21 = vmul.f32 0.6931472, %v2224_v6 }
 0x165   :  { %768 = vadd.xlane.f32.xlu1 %v767_v1  ;;  %v779_v1 = vsel %vm304_vm0, %v706_v62, 0.0  ;;  %1728 = vst.msk [vmem:[#allocation4 + $0x98] sm:$0xff] %vm25_vm3, %v1703_v44  ;;  %vm803_vm0 = vcmp.ge.s32.totalorder %v2293_v59, 0  ;;  %v1708_v44 = vadd.f32 %v3747_v17, %v1683_v53 }
 0x166   :  { %1497 = vadd.xlane.f32.xlu0 %v1496_v19  ;;  %v1505_v19 = vsel %vm1432_vm14, %v1431_v35, 0.0  ;;  %v3717_v56 = vsel %vm803_vm0, 1.0, %v2322_v54  ;;  %vm804_vm14 = vcmp.ge.s32.totalorder %v2294_v45, 0  ;;  %v2226_v35 = vpop.eup %2225  ;;  %v883_v0 = vmul.f32 %v3108_v7, %v533_v21 }
 0x167   :  { %v1705_v63 = vadd.f32 %v3717_v56, %v1680_v18  ;;  %v2228_v26 = vpop.eup %2227  ;;  %1733 = vst.msk [vmem:[#allocation4 + $0xc0] sm:$0xff] %vm25_vm3, %v1708_v44  ;;  %v539_v59 = vmul.f32 0.6931472, %v2226_v35  ;;  %v1514_v35 = vld [vmem:[#allocation2 + $0x30] sm:$0xff] }
 0x168   :  { %v537_v18 = vmul.f32 0.6931472, %v2228_v26  ;;  %v1513_v26 = vld [vmem:[#allocation2 + $0x28] sm:$0xff] }
 0x169   :  { %771 = vadd.xlane.f32.xlu1 %v770_v58  ;;  %v535_v58 = vmul.f32 0.6931472, %v2222_v20  ;;  %1730 = vst.msk [vmem:[#allocation4 + $0xa8] sm:$0xff] %vm25_vm3, %v1705_v63  ;;  %v886_v40 = vmul.f32 %v3152_v2, %v539_v59 }
 0x16a   :  { %1500 = vadd.xlane.f32.xlu0 %v1499_v34  ;;  %v885_v28 = vmul.f32 %v3178_v13, %v537_v18  ;;  %v1589_v18 = vld [vmem:[#allocation3 + $0x28] sm:$0xff] }
 0x16b   :  { %v884_v9 = vmul.f32 %v3059_v24, %v535_v58  ;;  %v1584_v24 = vld [vmem:[#allocation3] sm:$0xff] }
 0x16d   :  { %774 = vadd.xlane.f32.xlu1 %v773_v4  ;;  %v3727_v4 = vsel %vm804_vm14, 1.0, %v2322_v54 }
 0x16e   :  { %1503 = vadd.xlane.f32.xlu0 %v1502_v16  ;;  %v1706_v25 = vadd.f32 %v3727_v4, %v1681_v5  ;;  %v1511_v5 = vld [vmem:[#allocation2 + $0x18] sm:$0xff] }
 0x170   :  { %1731 = vst.msk [vmem:[#allocation4 + $0xb0] sm:$0xff] %vm25_vm3, %v1706_v25 }
 0x171   :  { %777 = vadd.xlane.f32.xlu1 %v776_v60  ;;  %v3737_v60 = vsel %vm805_vm4, 1.0, %v2322_v54 }
 0x172   :  { %v1707_v31 = vadd.f32 %v3737_v60, %v1682_v11  ;;  %v1587_v11 = vld [vmem:[#allocation3 + $0x18] sm:$0xff] }
 0x174   :  { %1732 = vst.msk [vmem:[#allocation4 + $0xb8] sm:$0xff] %vm25_vm3, %v1707_v31 }
 0x175   :  { %780 = vadd.xlane.f32.xlu1 %v779_v1 }
 0x179   :  { %1506 = vadd.xlane.f32.xlu1 %v1505_v19  ;;  %v1509_v19 = vld [vmem:[#allocation2 + $0x8] sm:$0xff] }
 0x17b   :  { %v709_v34 = vpop.xlane.xlu0 %708 }
 0x17c   :  { %v907_v22 = vsub.f32 %v709_v34, %v882_v10  ;;  %v1585_v10 = vld [vmem:[#allocation3 + $0x8] sm:$0xff] }
 0x17e   :  { %v1533_v61 = vadd.f32 %v1508_v32, %v907_v22  ;;  %v1512_v22 = vld [vmem:[#allocation2 + $0x20] sm:$0xff] }
 0x17f   :  { %v715_v30 = vpop.xlane.xlu0 %714 }
 0x180   :  { %1559 = vst.msk [vmem:[#allocation2] sm:$0xff] %vm25_vm3, %v1533_v61  ;;  %v909_v16 = vsub.f32 %v715_v30, %v884_v9 }
 0x182   :  { %v1535_v46 = vadd.f32 %v1510_v29, %v909_v16  ;;  %v2230_v29 = vpop.eup %2229 }
 0x183   :  { %v1435_v62 = vpop.xlane.xlu0 %1434  ;;  %v2232_v6 = vpop.eup %2231 }
 0x184   :  { %1561 = vst.msk [vmem:[#allocation2 + $0x10] sm:$0xff] %vm25_vm3, %v1535_v46  ;;  %v1609_v47 = vadd.f32 %v1584_v24, %v1435_v62  ;;  %v1588_v24 = vld [vmem:[#allocation3 + $0x20] sm:$0xff]  ;;  %v543_v46 = vmul.f32 0.6931472, %v2230_v29  ;;  %v541_v50 = vmul.f32 0.6931472, %v2232_v6 }
 0x185   :  { %v1592_v6 = vld [vmem:[#allocation3 + $0x40] sm:$0xff] }
 0x186   :  { %1634 = vst.msk [vmem:[#allocation3] sm:$0xff] %vm25_vm3, %v1609_v47  ;;  %v888_v47 = vmul.f32 %v3240_v51, %v543_v46  ;;  %v887_v44 = vmul.f32 %v3267_v55, %v541_v50  ;;  %v1906_v46 = vld [vmem:[#allocation4] sm:$0xff] }
 0x187   :  { %v3749_v1 = vpop.xlane.xlu0 %486 }
 0x188   :  { %2237 = vlog2.f32 %v3749_v1  ;;  %v1516_v1 = vld [vmem:[#allocation2 + $0x40] sm:$0xff] }
 0x189   :  { %2239 = vlog2.f32 %v3653_v36 }
 0x18a   :  { %v712_v20 = vpop.xlane.xlu1 %711 }
 0x18b   :  { %v908_v58 = vsub.f32 %v712_v20, %v883_v0  ;;  %v1441_v54 = vpop.xlane.xlu0 %1440 }
 0x18c   :  { %v1611_v34 = vadd.f32 %v1586_v27, %v1441_v54  ;;  %v1590_v54 = vld [vmem:[#allocation3 + $0x30] sm:$0xff] }
 0x18d   :  { %v1534_v45 = vadd.f32 %v1509_v19, %v908_v58  ;;  %v2234_v19 = vpop.eup %2233 }
 0x18e   :  { %v1438_v32 = vpop.xlane.xlu1 %1437  ;;  %1636 = vst.msk [vmem:[#allocation3 + $0x10] sm:$0xff] %vm25_vm3, %v1611_v34  ;;  %v2236_v58 = vpop.eup %2235 }
 0x18f   :  { %1560 = vst.msk [vmem:[#allocation2 + $0x8] sm:$0xff] %vm25_vm3, %v1534_v45  ;;  %v1610_v7 = vadd.f32 %v1585_v10, %v1438_v32  ;;  %v721_v63 = vpop.xlane.xlu0 %720  ;;  %v547_v10 = vmul.f32 0.6931472, %v2234_v19  ;;  %v545_v45 = vmul.f32 0.6931472, %v2236_v58 }
 0x190   :  { %v911_v61 = vsub.f32 %v721_v63, %v886_v40 }
 0x191   :  { %1635 = vst.msk [vmem:[#allocation3 + $0x8] sm:$0xff] %vm25_vm3, %v1610_v7  ;;  %v890_v40 = vmul.f32 %v3325_v39, %v547_v10  ;;  %v1909_v10 = vld [vmem:[#allocation4 + $0x18] sm:$0xff] }
 0x192   :  { %v718_v9 = vpop.xlane.xlu1 %717  ;;  %v1537_v42 = vadd.f32 %v1512_v22, %v911_v61  ;;  %v889_v61 = vmul.f32 %v3329_v57, %v545_v45  ;;  %v1907_v57 = vld [vmem:[#allocation4 + $0x8] sm:$0xff] }
 0x193   :  { %v910_v30 = vsub.f32 %v718_v9, %v885_v28  ;;  %v493_v25 = vpop.xlane.xlu0 %492  ;;  %v1515_v9 = vld [vmem:[#allocation2 + $0x38] sm:$0xff] }
 0x194   :  { %1563 = vst.msk [vmem:[#allocation2 + $0x20] sm:$0xff] %vm25_vm3, %v1537_v42  ;;  %v2238_v42 = vpop.eup %2237  ;;  %2241 = vlog2.f32 %v493_v25 }
 0x195   :  { %v1536_v16 = vadd.f32 %v1511_v5, %v910_v30 }
 0x196   :  { %v490_v2 = vpop.xlane.xlu1 %489 }
 0x197   :  { %1562 = vst.msk [vmem:[#allocation2 + $0x18] sm:$0xff] %vm25_vm3, %v1536_v16  ;;  %v1447_v13 = vpop.xlane.xlu0 %1446  ;;  %v2240_v16 = vpop.eup %2239  ;;  %2243 = vlog2.f32 %v490_v2 }
 0x198   :  { %v1613_v62 = vadd.f32 %v1588_v24, %v1447_v13  ;;  %v551_v24 = vmul.f32 0.6931472, %v2238_v42  ;;  %v549_v50 = vmul.f32 0.6931472, %v2240_v16  ;;  %v1911_v42 = vld [vmem:[#allocation4 + $0x28] sm:$0xff]  ;;  %v1520_v16 = vld [vmem:[#allocation2 + $0x60] sm:$0xff] }
 0x19a   :  { %v1444_v31 = vpop.xlane.xlu1 %1443  ;;  %1638 = vst.msk [vmem:[#allocation3 + $0x20] sm:$0xff] %vm25_vm3, %v1613_v62 }
 0x19b   :  { %v1612_v21 = vadd.f32 %v1587_v11, %v1444_v31  ;;  %v727_v53 = vpop.xlane.xlu0 %726  ;;  %v1591_v11 = vld [vmem:[#allocation3 + $0x38] sm:$0xff] }
 0x19c   :  { %v913_v12 = vsub.f32 %v727_v53, %v888_v47  ;;  %v1932_v47 = vsel %vm25_vm3, %v1907_v57, 0.0  ;;  %v892_v53 = vmul.f32 %v3417_v49, %v551_v24 }
 0x19d   :  { %1637 = vst.msk [vmem:[#allocation3 + $0x18] sm:$0xff] %vm25_vm3, %v1612_v21  ;;  %v1931_v21 = vsel %vm25_vm3, %v1906_v46, 0.0  ;;  %v1519_v46 = vld [vmem:[#allocation2 + $0x58] sm:$0xff] }
 0x19e   :  { %v724_v0 = vpop.xlane.xlu1 %723  ;;  %v1539_v8 = vadd.f32 %v1514_v35, %v913_v12  ;;  %v1908_v35 = vld [vmem:[#allocation4 + $0x10] sm:$0xff] }
 0x19f   :  { %v912_v20 = vsub.f32 %v724_v0, %v887_v44  ;;  %v3769_v27 = vpop.xlane.xlu0 %498  ;;  %v1518_v44 = vld [vmem:[#allocation2 + $0x50] sm:$0xff]  ;;  %v891_v0 = vmul.f32 %v3421_v14, %v549_v50  ;;  %v1934_v19 = vsel %vm25_vm3, %v1908_v35, 0.0  ;;  %v1594_v14 = vld [vmem:[#allocation3 + $0x50] sm:$0xff] }
 0x1a0   :  { %1565 = vst.msk [vmem:[#allocation2 + $0x30] sm:$0xff] %vm25_vm3, %v1539_v8  ;;  %2245 = vlog2.f32 %v3769_v27 }
 0x1a1   :  { %v1538_v59 = vadd.f32 %v1513_v26, %v912_v20  ;;  %v1933_v26 = vadd.f32 %v1932_v47, %v1931_v21  ;;  %v1517_v20 = vld [vmem:[#allocation2 + $0x48] sm:$0xff] }
 0x1a2   :  { %v3773_v51 = vpop.xlane.xlu1 %495 }
 0x1a3   :  { %1564 = vst.msk [vmem:[#allocation2 + $0x28] sm:$0xff] %vm25_vm3, %v1538_v59  ;;  %v1453_v55 = vpop.xlane.xlu0 %1452  ;;  %v1935_v45 = vadd.f32 %v1934_v19, %v1933_v26  ;;  %2247 = vlog2.f32 %v3773_v51  ;;  %v1913_v26 = vld [vmem:[#allocation4 + $0x38] sm:$0xff] }
 0x1a4   :  { %v1615_v34 = vadd.f32 %v1590_v54, %v1453_v55  ;;  %v2242_v54 = vpop.eup %2241  ;;  %v1823_v19 = vld [vmem:[#allocation3] sm:$0xff] }
 0x1a6   :  { %v1450_v32 = vpop.xlane.xlu1 %1449  ;;  %1640 = vst.msk [vmem:[#allocation3 + $0x30] sm:$0xff] %vm25_vm3, %v1615_v34 }
 0x1a7   :  { %v1614_v7 = vadd.f32 %v1589_v18, %v1450_v32  ;;  %v733_v63 = vpop.xlane.xlu0 %732  ;;  %v2244_v18 = vpop.eup %2243  ;;  %v1936_v32 = vsel %vm25_vm3, %v1909_v10, 0.0 }
 0x1a8   :  { %v915_v22 = vsub.f32 %v733_v63, %v890_v40  ;;  %v1910_v40 = vld [vmem:[#allocation4 + $0x20] sm:$0xff] }
 0x1a9   :  { %1639 = vst.msk [vmem:[#allocation3 + $0x28] sm:$0xff] %vm25_vm3, %v1614_v7  ;;  %v555_v7 = vmul.f32 0.6931472, %v2242_v54 }
 0x1aa   :  { %v730_v28 = vpop.xlane.xlu1 %729  ;;  %v1541_v36 = vadd.f32 %v1516_v1, %v915_v22  ;;  %v1593_v1 = vld [vmem:[#allocation3 + $0x48] sm:$0xff]  ;;  %v553_v22 = vmul.f32 0.6931472, %v2244_v18  ;;  %v1738_v18 = vld [vmem:[#allocation2 + $0x8] sm:$0xff] }
 0x1ab   :  { %v914_v5 = vsub.f32 %v730_v28, %v889_v61  ;;  %v3781_v30 = vpop.xlane.xlu0 %504  ;;  %v1937_v28 = vadd.f32 %v1936_v32, %v1935_v45  ;;  %v1848_v32 = vsel %vm25_vm3, %v1823_v19, 0.0 }
 0x1ac   :  { %1567 = vst.msk [vmem:[#allocation2 + $0x40] sm:$0xff] %vm25_vm3, %v1541_v36  ;;  %v1938_v36 = vsel %vm25_vm3, %v1910_v40, 0.0  ;;  %v893_v51 = vmul.f32 %v3500_v38, %v553_v22  ;;  %2249 = vlog2.f32 %v3781_v30  ;;  %v1596_v38 = vld [vmem:[#allocation3 + $0x60] sm:$0xff]  ;;  %v1825_v22 = vld [vmem:[#allocation3 + $0x10] sm:$0xff] }
 0x1ad   :  { %v1540_v29 = vadd.f32 %v1515_v9, %v914_v5  ;;  %v894_v5 = vmul.f32 %v3487_v15, %v555_v7  ;;  %v1939_v57 = vadd.f32 %v1938_v36, %v1937_v28  ;;  %v1826_v28 = vld [vmem:[#allocation3 + $0x18] sm:$0xff]  ;;  %v1763_v36 = vsel %vm25_vm3, %v1738_v18, 0.0 }
 0x1ae   :  { %v3784_v39 = vpop.xlane.xlu1 %501 }
 0x1af   :  { %1566 = vst.msk [vmem:[#allocation2 + $0x38] sm:$0xff] %vm25_vm3, %v1540_v29  ;;  %v1459_v13 = vpop.xlane.xlu0 %1458  ;;  %2251 = vlog2.f32 %v3784_v39  ;;  %v1522_v39 = vld [vmem:[#allocation2 + $0x70] sm:$0xff] }
 0x1b0   :  { %v1617_v62 = vadd.f32 %v1592_v6, %v1459_v13  ;;  %v1940_v13 = vsel %vm25_vm3, %v1911_v42, 0.0 }
 0x1b2   :  { %v1456_v31 = vpop.xlane.xlu1 %1455  ;;  %1642 = vst.msk [vmem:[#allocation3 + $0x40] sm:$0xff] %vm25_vm3, %v1617_v62  ;;  %v2246_v62 = vpop.eup %2245 }
 0x1b3   :  { %v1616_v25 = vadd.f32 %v1591_v11, %v1456_v31  ;;  %v739_v12 = vpop.xlane.xlu0 %738  ;;  %v1912_v31 = vld [vmem:[#allocation4 + $0x30] sm:$0xff]  ;;  %v2248_v47 = vpop.eup %2247  ;;  %v559_v35 = vmul.f32 0.6931472, %v2246_v62 }
 0x1b4   :  { %v917_v2 = vsub.f32 %v739_v12, %v892_v53  ;;  %v1941_v53 = vadd.f32 %v1940_v13, %v1939_v57  ;;  %v1942_v12 = vsel %vm25_vm3, %v1912_v31, 0.0  ;;  %v1739_v13 = vld [vmem:[#allocation2 + $0x10] sm:$0xff] }
 0x1b5   :  { %1641 = vst.msk [vmem:[#allocation3 + $0x38] sm:$0xff] %vm25_vm3, %v1616_v25  ;;  %v896_v10 = vmul.f32 %v3568_v41, %v559_v35  ;;  %v1916_v35 = vld [vmem:[#allocation4 + $0x50] sm:$0xff] }
 0x1b6   :  { %v736_v8 = vpop.xlane.xlu1 %735  ;;  %v1543_v59 = vadd.f32 %v1518_v44, %v917_v2  ;;  %v1824_v44 = vld [vmem:[#allocation3 + $0x8] sm:$0xff]  ;;  %v1943_v30 = vadd.f32 %v1942_v12, %v1941_v53 }
 0x1b7   :  { %v916_v58 = vsub.f32 %v736_v8, %v891_v0  ;;  %v3794_v55 = vpop.xlane.xlu0 %510  ;;  %v1595_v0 = vld [vmem:[#allocation3 + $0x58] sm:$0xff]  ;;  %v557_v8 = vmul.f32 0.6931472, %v2248_v47 }
 0x1b8   :  { %1569 = vst.msk [vmem:[#allocation2 + $0x50] sm:$0xff] %vm25_vm3, %v1543_v59 }
 0x1b9   :  { %v1542_v49 = vadd.f32 %v1517_v20, %v916_v58  ;;  %v1849_v58 = vsel %vm25_vm3, %v1824_v44, 0.0  ;;  %v895_v40 = vmul.f32 %v3577_v43, %v557_v8  ;;  %v1851_v43 = vsel %vm25_vm3, %v1825_v22, 0.0 }
 0x1ba   :  { %v3798_v34 = vpop.xlane.xlu1 %507  ;;  %v1765_v8 = vsel %vm25_vm3, %v1739_v13, 0.0 }
 0x1bb   :  { %1568 = vst.msk [vmem:[#allocation2 + $0x48] sm:$0xff] %vm25_vm3, %v1542_v49  ;;  %v1465_v63 = vpop.xlane.xlu0 %1464  ;;  %v1944_v49 = vsel %vm25_vm3, %v1913_v26, 0.0  ;;  %2253 = vlog2.f32 %v3798_v34  ;;  %v1597_v26 = vld [vmem:[#allocation3 + $0x68] sm:$0xff] }
 0x1bc   :  { %v1619_v61 = vadd.f32 %v1594_v14, %v1465_v63  ;;  %v1914_v14 = vld [vmem:[#allocation4 + $0x40] sm:$0xff]  ;;  %v1521_v63 = vld [vmem:[#allocation2 + $0x68] sm:$0xff]  ;;  %v1945_v41 = vadd.f32 %v1944_v49, %v1943_v30  ;;  %v1950_v49 = vsel %vm25_vm3, %v1916_v35, 0.0  ;;  %2255 = vlog2.f32 %v3794_v55  ;;  %v1830_v55 = vld [vmem:[#allocation3 + $0x38] sm:$0xff] }
 0x1bd   :  { %v1946_v42 = vsel %vm25_vm3, %v1914_v14, 0.0  ;;  %v1741_v14 = vld [vmem:[#allocation2 + $0x20] sm:$0xff] }
 0x1be   :  { %v1462_v9 = vpop.xlane.xlu1 %1461  ;;  %1644 = vst.msk [vmem:[#allocation3 + $0x50] sm:$0xff] %vm25_vm3, %v1619_v61  ;;  %v1850_v61 = vadd.f32 %v1849_v58, %v1848_v32  ;;  %v1947_v47 = vadd.f32 %v1946_v42, %v1945_v41 }
 0x1bf   :  { %v1618_v27 = vadd.f32 %v1593_v1, %v1462_v9  ;;  %v745_v29 = vpop.xlane.xlu0 %744  ;;  %v1737_v1 = vld [vmem:[#allocation2] sm:$0xff] }
 0x1c0   :  { %v919_v6 = vsub.f32 %v745_v29, %v894_v5  ;;  %v2250_v29 = vpop.eup %2249  ;;  %v1852_v62 = vadd.f32 %v1851_v43, %v1850_v61 }
 0x1c1   :  { %1643 = vst.msk [vmem:[#allocation3 + $0x48] sm:$0xff] %vm25_vm3, %v1618_v27  ;;  %v2252_v57 = vpop.eup %2251  ;;  %v563_v53 = vmul.f32 0.6931472, %v2250_v29 }
 0x1c2   :  { %v742_v24 = vpop.xlane.xlu1 %741  ;;  %v1545_v11 = vadd.f32 %v1520_v16, %v919_v6  ;;  %v1915_v6 = vld [vmem:[#allocation4 + $0x48] sm:$0xff]  ;;  %v561_v19 = vmul.f32 0.6931472, %v2252_v57 }
 0x1c3   :  { %v918_v50 = vsub.f32 %v742_v24, %v893_v51  ;;  %v3809_v21 = vpop.xlane.xlu0 %516  ;;  %v1762_v51 = vsel %vm25_vm3, %v1737_v1, 0.0  ;;  %v1853_v24 = vsel %vm25_vm3, %v1826_v28, 0.0  ;;  %v1948_v12 = vsel %vm25_vm3, %v1915_v6, 0.0  ;;  %v1524_v1 = vld [vmem:[#allocation2 + $0x80] sm:$0xff]  ;;  %v1829_v28 = vld [vmem:[#allocation3 + $0x30] sm:$0xff] }
 0x1c4   :  { %1571 = vst.msk [vmem:[#allocation2 + $0x60] sm:$0xff] %vm25_vm3, %v1545_v11  ;;  %v1764_v11 = vadd.f32 %v1763_v36, %v1762_v51  ;;  %v1854_v44 = vadd.f32 %v1853_v24, %v1852_v62  ;;  %v897_v61 = vmul.f32 %v3645_v37, %v561_v19  ;;  %v1523_v36 = vld [vmem:[#allocation2 + $0x78] sm:$0xff]  ;;  %v1918_v37 = vld [vmem:[#allocation4 + $0x60] sm:$0xff]  ;;  %v1859_v24 = vsel %vm25_vm3, %v1829_v28, 0.0 }
 0x1c5   :  { %v1544_v15 = vadd.f32 %v1519_v46, %v918_v50  ;;  %v1740_v50 = vld [vmem:[#allocation2 + $0x18] sm:$0xff]  ;;  %v2254_v13 = vpop.eup %2253  ;;  %v1954_v35 = vsel %vm25_vm3, %v1918_v37, 0.0 }
 0x1c6   :  { %v3813_v25 = vpop.xlane.xlu1 %513  ;;  %v1766_v30 = vadd.f32 %v1765_v8, %v1764_v11  ;;  %v1743_v11 = vld [vmem:[#allocation2 + $0x30] sm:$0xff]  ;;  %v1744_v62 = vld [vmem:[#allocation2 + $0x38] sm:$0xff]  ;;  %v2256_v8 = vpop.eup %2255  ;;  %v565_v19 = vmul.f32 0.6931472, %v2254_v13 }
 0x1c7   :  { %1570 = vst.msk [vmem:[#allocation2 + $0x58] sm:$0xff] %vm25_vm3, %v1544_v15  ;;  %v1471_v2 = vpop.xlane.xlu0 %1470  ;;  %v1598_v15 = vld [vmem:[#allocation3 + $0x70] sm:$0xff]  ;;  %2257 = vlog2.f32 %v3813_v25  ;;  %v1599_v25 = vld [vmem:[#allocation3 + $0x78] sm:$0xff] }
 0x1c8   :  { %v1621_v20 = vadd.f32 %v1596_v38, %v1471_v2  ;;  %v1827_v38 = vld [vmem:[#allocation3 + $0x20] sm:$0xff]  ;;  %v1828_v2 = vld [vmem:[#allocation3 + $0x28] sm:$0xff]  ;;  %2259 = vlog2.f32 %v3809_v21  ;;  %v1833_v28 = vld [vmem:[#allocation3 + $0x50] sm:$0xff] }
 0x1c9   :  { %v1855_v58 = vsel %vm25_vm3, %v1827_v38, 0.0  ;;  %v1857_v18 = vsel %vm25_vm3, %v1828_v2, 0.0  ;;  %v1832_v2 = vld [vmem:[#allocation3 + $0x48] sm:$0xff] }
 0x1ca   :  { %v1468_v59 = vpop.xlane.xlu1 %1467  ;;  %1646 = vst.msk [vmem:[#allocation3 + $0x60] sm:$0xff] %vm25_vm3, %v1621_v20  ;;  %v1767_v20 = vsel %vm25_vm3, %v1740_v50, 0.0 }
 0x1cb   :  { %v1620_v54 = vadd.f32 %v1595_v0, %v1468_v59  ;;  %v751_v45 = vpop.xlane.xlu0 %750  ;;  %v1768_v32 = vadd.f32 %v1767_v20, %v1766_v30  ;;  %v1773_v20 = vsel %vm25_vm3, %v1743_v11, 0.0  ;;  %v1775_v30 = vsel %vm25_vm3, %v1744_v62, 0.0 }
 0x1cc   :  { %v921_v7 = vsub.f32 %v751_v45, %v896_v10  ;;  %v1949_v10 = vadd.f32 %v1948_v12, %v1947_v47  ;;  %v898_v45 = vmul.f32 %v3640_v33, %v563_v53  ;;  %v1600_v47 = vld [vmem:[#allocation3 + $0x80] sm:$0xff] }
 0x1cd   :  { %1645 = vst.msk [vmem:[#allocation3 + $0x58] sm:$0xff] %vm25_vm3, %v1620_v54  ;;  %v1831_v12 = vld [vmem:[#allocation3 + $0x40] sm:$0xff] }
 0x1ce   :  { %v748_v9 = vpop.xlane.xlu1 %747  ;;  %v1547_v27 = vadd.f32 %v1522_v39, %v921_v7  ;;  %v1917_v39 = vld [vmem:[#allocation4 + $0x58] sm:$0xff]  ;;  %v1863_v21 = vsel %vm25_vm3, %v1831_v12, 0.0  ;;  %v1748_v62 = vld [vmem:[#allocation2 + $0x58] sm:$0xff] }
 0x1cf   :  { %v920_v5 = vsub.f32 %v748_v9, %v895_v40  ;;  %v3827_v16 = vpop.xlane.xlu0 %522  ;;  %v1742_v7 = vld [vmem:[#allocation2 + $0x28] sm:$0xff]  ;;  %v1856_v40 = vadd.f32 %v1855_v58, %v1854_v44  ;;  %v1952_v33 = vsel %vm25_vm3, %v1917_v39, 0.0 }
 0x1d0   :  { %1573 = vst.msk [vmem:[#allocation2 + $0x70] sm:$0xff] %vm25_vm3, %v1547_v27  ;;  %v1951_v27 = vadd.f32 %v1950_v49, %v1949_v10  ;;  %v1771_v42 = vsel %vm25_vm3, %v1742_v7, 0.0  ;;  %v1745_v7 = vld [vmem:[#allocation2 + $0x40] sm:$0xff] }
 0x1d1   :  { %v1546_v46 = vadd.f32 %v1521_v63, %v920_v5  ;;  %v1858_v9 = vadd.f32 %v1857_v18, %v1856_v40  ;;  %v1769_v5 = vsel %vm25_vm3, %v1741_v14, 0.0  ;;  %v567_v14 = vmul.f32 0.6931472, %v2256_v8  ;;  %v1746_v40 = vld [vmem:[#allocation2 + $0x48] sm:$0xff] }
 0x1d2   :  { %v3833_v31 = vpop.xlane.xlu1 %519  ;;  %v1770_v51 = vadd.f32 %v1769_v5, %v1768_v32  ;;  %v1953_v53 = vadd.f32 %v1952_v33, %v1951_v27  ;;  %v1783_v8 = vsel %vm25_vm3, %v1748_v62, 0.0 }
 0x1d3   :  { %1572 = vst.msk [vmem:[#allocation2 + $0x68] sm:$0xff] %vm25_vm3, %v1546_v46  ;;  %v1477_v0 = vpop.xlane.xlu0 %1476  ;;  %v1861_v46 = vsel %vm25_vm3, %v1830_v55, 0.0  ;;  %v1860_v38 = vadd.f32 %v1859_v24, %v1858_v9  ;;  %2261 = vlog2.f32 %v3833_v31  ;;  %v2258_v9 = vpop.eup %2257  ;;  %v1867_v24 = vsel %vm25_vm3, %v1833_v28, 0.0  ;;  %v1923_v28 = vld [vmem:[#allocation4 + $0x88] sm:$0xff] }
 0x1d4   :  { %v1623_v59 = vadd.f32 %v1598_v15, %v1477_v0  ;;  %v1772_v50 = vadd.f32 %v1771_v42, %v1770_v51  ;;  %v1955_v49 = vadd.f32 %v1954_v35, %v1953_v53  ;;  %v1834_v27 = vld [vmem:[#allocation3 + $0x58] sm:$0xff]  ;;  %2263 = vlog2.f32 %v3827_v16  ;;  %v1526_v53 = vld [vmem:[#allocation2 + $0x90] sm:$0xff] }
 0x1d5   :  { %v1862_v0 = vadd.f32 %v1861_v46, %v1860_v38  ;;  %v900_v51 = vmul.f32 %v3687_v48, %v567_v14  ;;  %v1921_v46 = vld [vmem:[#allocation4 + $0x78] sm:$0xff]  ;;  %v1869_v16 = vsel %vm25_vm3, %v1834_v27, 0.0 }
 0x1d6   :  { %v1474_v54 = vpop.xlane.xlu1 %1473  ;;  %1648 = vst.msk [vmem:[#allocation3 + $0x70] sm:$0xff] %vm25_vm3, %v1623_v59  ;;  %v1774_v10 = vadd.f32 %v1773_v20, %v1772_v50  ;;  %v1747_v50 = vld [vmem:[#allocation2 + $0x50] sm:$0xff]  ;;  %v1835_v20 = vld [vmem:[#allocation3 + $0x60] sm:$0xff] }
 0x1d7   :  { %v1622_v34 = vadd.f32 %v1597_v26, %v1474_v54  ;;  %v757_v63 = vpop.xlane.xlu0 %756  ;;  %v1919_v26 = vld [vmem:[#allocation4 + $0x68] sm:$0xff]  ;;  %v1601_v54 = vld [vmem:[#allocation3 + $0x88] sm:$0xff] }
 0x1d8   :  { %v923_v22 = vsub.f32 %v757_v63, %v898_v45  ;;  %v1920_v45 = vld [vmem:[#allocation4 + $0x70] sm:$0xff]  ;;  %v1956_v39 = vsel %vm25_vm3, %v1919_v26, 0.0  ;;  %v1776_v63 = vadd.f32 %v1775_v30, %v1774_v10  ;;  %v1781_v26 = vsel %vm25_vm3, %v1747_v50, 0.0  ;;  %v1922_v30 = vld [vmem:[#allocation4 + $0x80] sm:$0xff] }
 0x1d9   :  { %1647 = vst.msk [vmem:[#allocation3 + $0x68] sm:$0xff] %vm25_vm3, %v1622_v34  ;;  %v1865_v34 = vsel %vm25_vm3, %v1832_v2, 0.0  ;;  %v1957_v5 = vadd.f32 %v1956_v39, %v1955_v49  ;;  %v1958_v31 = vsel %vm25_vm3, %v1920_v45, 0.0  ;;  %v1960_v2 = vsel %vm25_vm3, %v1921_v46, 0.0  ;;  %v1604_v45 = vld [vmem:[#allocation3 + $0xa0] sm:$0xff] }
 0x1da   :  { %v754_v41 = vpop.xlane.xlu1 %753  ;;  %v1549_v29 = vadd.f32 %v1524_v1, %v923_v22  ;;  %v1864_v1 = vadd.f32 %v1863_v21, %v1862_v0 }
 0x1db   :  { %v922_v6 = vsub.f32 %v754_v41, %v897_v61  ;;  %v3852_v43 = vpop.xlane.xlu0 %528  ;;  %v899_v61 = vmul.f32 %v3674_v52, %v565_v19  ;;  %v1525_v41 = vld [vmem:[#allocation2 + $0x88] sm:$0xff] }
 0x1dc   :  { %1575 = vst.msk [vmem:[#allocation2 + $0x80] sm:$0xff] %vm25_vm3, %v1549_v29  ;;  %v1866_v33 = vadd.f32 %v1865_v34, %v1864_v1  ;;  %v1777_v29 = vsel %vm25_vm3, %v1745_v7, 0.0  ;;  %v1527_v34 = vld [vmem:[#allocation2 + $0x98] sm:$0xff]  ;;  %v1750_v1 = vld [vmem:[#allocation2 + $0x68] sm:$0xff] }
 0x1dd   :  { %v1548_v57 = vadd.f32 %v1523_v36, %v922_v6  ;;  %v1602_v36 = vld [vmem:[#allocation3 + $0x90] sm:$0xff]  ;;  %v1779_v6 = vsel %vm25_vm3, %v1746_v40, 0.0  ;;  %v1778_v37 = vadd.f32 %v1777_v29, %v1776_v63  ;;  %v1962_v40 = vsel %vm25_vm3, %v1922_v30, 0.0  ;;  %v1749_v63 = vld [vmem:[#allocation2 + $0x60] sm:$0xff] }
 0x1de   :  { %v3857_v15 = vpop.xlane.xlu1 %525  ;;  %v1868_v12 = vadd.f32 %v1867_v24, %v1866_v33  ;;  %v1837_v33 = vld [vmem:[#allocation3 + $0x70] sm:$0xff]  ;;  %v1964_v24 = vsel %vm25_vm3, %v1923_v28, 0.0 }
 0x1df   :  { %1574 = vst.msk [vmem:[#allocation2 + $0x78] sm:$0xff] %vm25_vm3, %v1548_v57  ;;  %v1483_v44 = vpop.xlane.xlu0 %1482  ;;  %v569_v57 = vmul.f32 0.6931472, %v2258_v9  ;;  %v1780_v35 = vadd.f32 %v1779_v6, %v1778_v37  ;;  %2265 = vlog2.f32 %v3857_v15  ;;  %v1787_v37 = vsel %vm25_vm3, %v1750_v1, 0.0 }
 0x1e0   :  { %v1625_v59 = vadd.f32 %v1600_v47, %v1483_v44  ;;  %v2260_v47 = vpop.eup %2259  ;;  %v1959_v44 = vadd.f32 %v1958_v31, %v1957_v5  ;;  %v1836_v19 = vld [vmem:[#allocation3 + $0x68] sm:$0xff]  ;;  %2267 = vlog2.f32 %v3852_v43  ;;  %v1528_v31 = vld [vmem:[#allocation2 + $0xa0] sm:$0xff] }
 0x1e1   :  { %v901_v49 = vmul.f32 %v3697_v3, %v569_v57  ;;  %v1782_v39 = vadd.f32 %v1781_v26, %v1780_v35  ;;  %v1873_v7 = vsel %vm25_vm3, %v1836_v19, 0.0  ;;  %v1529_v35 = vld [vmem:[#allocation2 + $0xa8] sm:$0xff] }
 0x1e2   :  { %v1480_v58 = vpop.xlane.xlu1 %1479  ;;  %1650 = vst.msk [vmem:[#allocation3 + $0x80] sm:$0xff] %vm25_vm3, %v1625_v59  ;;  %v1870_v59 = vadd.f32 %v1869_v16, %v1868_v12  ;;  %v1961_v15 = vadd.f32 %v1960_v2, %v1959_v44  ;;  %v1606_v12 = vld [vmem:[#allocation3 + $0xb0] sm:$0xff] }
 0x1e3   :  { %v1624_v18 = vadd.f32 %v1599_v25, %v1480_v58  ;;  %v1486_v32 = vpop.xlane.xlu0 %1485  ;;  %v1603_v25 = vld [vmem:[#allocation3 + $0x98] sm:$0xff]  ;;  %v571_v58 = vmul.f32 0.6931472, %v2260_v47  ;;  %v1751_v47 = vld [vmem:[#allocation2 + $0x70] sm:$0xff] }
 0x1e4   :  { %v1626_v22 = vadd.f32 %v1601_v54, %v1486_v32  ;;  %v1871_v32 = vsel %vm25_vm3, %v1835_v20, 0.0  ;;  %v1789_v19 = vsel %vm25_vm3, %v1751_v47, 0.0 }
 0x1e5   :  { %1649 = vst.msk [vmem:[#allocation3 + $0x78] sm:$0xff] %vm25_vm3, %v1624_v18  ;;  %v2262_v18 = vpop.eup %2261  ;;  %v902_v27 = vmul.f32 %v3706_v23, %v571_v58  ;;  %v1925_v58 = vld [vmem:[#allocation4 + $0x98] sm:$0xff] }
 0x1e6   :  { %v760_v55 = vpop.xlane.xlu1 %759  ;;  %1651 = vst.msk [vmem:[#allocation3 + $0x88] sm:$0xff] %vm25_vm3, %v1626_v22  ;;  %v1784_v22 = vadd.f32 %v1783_v8, %v1782_v39  ;;  %v2264_v9 = vpop.eup %2263  ;;  %v1752_v44 = vld [vmem:[#allocation2 + $0x78] sm:$0xff]  ;;  %v1607_v39 = vld [vmem:[#allocation3 + $0xb8] sm:$0xff] }
 0x1e7   :  { %v924_v42 = vsub.f32 %v760_v55, %v899_v61  ;;  %v1489_v52 = vpop.xlane.xlu0 %1488  ;;  %v1872_v61 = vadd.f32 %v1871_v32, %v1870_v59  ;;  %v573_v55 = vmul.f32 0.6931472, %v2262_v18  ;;  %v575_v46 = vmul.f32 0.6931472, %v2264_v9 }
 0x1e8   :  { %v1627_v11 = vadd.f32 %v1602_v36, %v1489_v52  ;;  %v1963_v52 = vadd.f32 %v1962_v40, %v1961_v15  ;;  %v1791_v18 = vsel %vm25_vm3, %v1752_v44, 0.0  ;;  %v1968_v40 = vsel %vm25_vm3, %v1925_v58, 0.0 }
 0x1e9   :  { %v1550_v13 = vadd.f32 %v1525_v41, %v924_v42  ;;  %v1605_v42 = vld [vmem:[#allocation3 + $0xa8] sm:$0xff]  ;;  %v1874_v6 = vadd.f32 %v1873_v7, %v1872_v61  ;;  %v903_v16 = vmul.f32 %v3717_v56, %v573_v55  ;;  %v904_v56 = vmul.f32 %v3727_v4, %v575_v46  ;;  %v1839_v59 = vld [vmem:[#allocation3 + $0x80] sm:$0xff]  ;;  %v1927_v46 = vld [vmem:[#allocation4 + $0xa8] sm:$0xff] }
 0x1ea   :  { %v763_v38 = vpop.xlane.xlu1 %762  ;;  %1652 = vst.msk [vmem:[#allocation3 + $0x90] sm:$0xff] %vm25_vm3, %v1627_v11  ;;  %v1924_v11 = vld [vmem:[#allocation4 + $0x90] sm:$0xff]  ;;  %v1879_v32 = vsel %vm25_vm3, %v1839_v59, 0.0  ;;  %v1926_v7 = vld [vmem:[#allocation4 + $0xa0] sm:$0xff]  ;;  %v1972_v44 = vsel %vm25_vm3, %v1927_v46, 0.0 }
 0x1eb   :  { %1576 = vst.msk [vmem:[#allocation2 + $0x88] sm:$0xff] %vm25_vm3, %v1550_v13  ;;  %v925_v48 = vsub.f32 %v763_v38, %v900_v51  ;;  %v1492_v0 = vpop.xlane.xlu0 %1491  ;;  %v1785_v51 = vsel %vm25_vm3, %v1749_v63, 0.0  ;;  %v1875_v13 = vsel %vm25_vm3, %v1837_v33, 0.0  ;;  %v1966_v8 = vsel %vm25_vm3, %v1924_v11, 0.0  ;;  %v1753_v63 = vld [vmem:[#allocation2 + $0x80] sm:$0xff]  ;;  %v1531_v33 = vld [vmem:[#allocation2 + $0xb8] sm:$0xff] }
 0x1ec   :  { %v1628_v10 = vadd.f32 %v1603_v25, %v1492_v0  ;;  %v1838_v29 = vld [vmem:[#allocation3 + $0x78] sm:$0xff]  ;;  %v1786_v57 = vadd.f32 %v1785_v51, %v1784_v22  ;;  %v1876_v2 = vadd.f32 %v1875_v13, %v1874_v6  ;;  %v1965_v0 = vadd.f32 %v1964_v24, %v1963_v52 }
 0x1ed   :  { %v1551_v54 = vadd.f32 %v1526_v53, %v925_v48  ;;  %v1877_v38 = vsel %vm25_vm3, %v1838_v29, 0.0  ;;  %v2266_v53 = vpop.eup %2265  ;;  %v1840_v61 = vld [vmem:[#allocation3 + $0x88] sm:$0xff]  ;;  %v1970_v29 = vsel %vm25_vm3, %v1926_v7, 0.0  ;;  %v1793_v52 = vsel %vm25_vm3, %v1753_v63, 0.0 }
 0x1ee   :  { %v766_v21 = vpop.xlane.xlu1 %765  ;;  %1653 = vst.msk [vmem:[#allocation3 + $0x98] sm:$0xff] %vm25_vm3, %v1628_v10  ;;  %v1788_v48 = vadd.f32 %v1787_v37, %v1786_v57  ;;  %v1878_v30 = vadd.f32 %v1877_v38, %v1876_v2  ;;  %v1881_v51 = vsel %vm25_vm3, %v1840_v61, 0.0 }
 0x1ef   :  { %1577 = vst.msk [vmem:[#allocation2 + $0x90] sm:$0xff] %vm25_vm3, %v1551_v54  ;;  %v926_v14 = vsub.f32 %v766_v21, %v901_v49  ;;  %v1495_v3 = vpop.xlane.xlu0 %1494  ;;  %v577_v54 = vmul.f32 0.6931472, %v2266_v53  ;;  %v2268_v21 = vpop.eup %2267 }
 0x1f0   :  { %v1629_v36 = vadd.f32 %v1604_v45, %v1495_v3  ;;  %v1530_v45 = vld [vmem:[#allocation2 + $0xb0] sm:$0xff]  ;;  %v1790_v15 = vadd.f32 %v1789_v19, %v1788_v48  ;;  %v1880_v28 = vadd.f32 %v1879_v32, %v1878_v30  ;;  %v579_v9 = vmul.f32 0.6931472, %v2268_v21 }
 0x1f1   :  { %v1552_v41 = vadd.f32 %v1527_v34, %v926_v14  ;;  %v1967_v14 = vadd.f32 %v1966_v8, %v1965_v0 }
 0x1f2   :  { %v769_v5 = vpop.xlane.xlu1 %768  ;;  %1654 = vst.msk [vmem:[#allocation3 + $0xa0] sm:$0xff] %vm25_vm3, %v1629_v36  ;;  %v1754_v1 = vld [vmem:[#allocation2 + $0x88] sm:$0xff]  ;;  %v1792_v22 = vadd.f32 %v1791_v18, %v1790_v15  ;;  %v905_v36 = vmul.f32 %v3737_v60, %v577_v54  ;;  %v1882_v24 = vadd.f32 %v1881_v51, %v1880_v28  ;;  %v906_v57 = vmul.f32 %v3747_v17, %v579_v9 }
 0x1f3   :  { %1578 = vst.msk [vmem:[#allocation2 + $0x98] sm:$0xff] %vm25_vm3, %v1552_v41  ;;  %v927_v43 = vsub.f32 %v769_v5, %v902_v27  ;;  %v1498_v23 = vpop.xlane.xlu0 %1497  ;;  %v1929_v15 = vld [vmem:[#allocation4 + $0xb8] sm:$0xff] }
 0x1f4   :  { %v1630_v62 = vadd.f32 %v1605_v42, %v1498_v23  ;;  %v1969_v42 = vadd.f32 %v1968_v40, %v1967_v14  ;;  %v1794_v60 = vadd.f32 %v1793_v52, %v1792_v22  ;;  %v1976_v61 = vsel %vm25_vm3, %v1929_v15, 0.0 }
 0x1f5   :  { %v1553_v50 = vadd.f32 %v1528_v31, %v927_v43  ;;  %v1841_v31 = vld [vmem:[#allocation3 + $0x90] sm:$0xff]  ;;  %v1795_v43 = vsel %vm25_vm3, %v1754_v1, 0.0  ;;  %v1842_v38 = vld [vmem:[#allocation3 + $0x98] sm:$0xff] }
 0x1f6   :  { %v772_v25 = vpop.xlane.xlu1 %771  ;;  %1655 = vst.msk [vmem:[#allocation3 + $0xa8] sm:$0xff] %vm25_vm3, %v1630_v62  ;;  %v1755_v5 = vld [vmem:[#allocation2 + $0x90] sm:$0xff]  ;;  %v1883_v11 = vsel %vm25_vm3, %v1841_v31, 0.0  ;;  %v1532_v62 = vld [vmem:[#allocation2 + $0xc0] sm:$0xff]  ;;  %v1796_v47 = vadd.f32 %v1795_v43, %v1794_v60  ;;  %v1971_v53 = vadd.f32 %v1970_v29, %v1969_v42 }
 0x1f7   :  { %1579 = vst.msk [vmem:[#allocation2 + $0xa0] sm:$0xff] %vm25_vm3, %v1553_v50  ;;  %v928_v26 = vsub.f32 %v772_v25, %v903_v16  ;;  %v1501_v20 = vpop.xlane.xlu0 %1500  ;;  %v1797_v13 = vsel %vm25_vm3, %v1755_v5, 0.0  ;;  %v1884_v0 = vadd.f32 %v1883_v11, %v1882_v24 }
 0x1f8   :  { %v1631_v49 = vadd.f32 %v1606_v12, %v1501_v20  ;;  %v1798_v17 = vadd.f32 %v1797_v13, %v1796_v47  ;;  %v1973_v54 = vadd.f32 %v1972_v44, %v1971_v53 }
 0x1f9   :  { %v1554_v10 = vadd.f32 %v1529_v35, %v928_v26  ;;  %v1608_v35 = vld [vmem:[#allocation3 + $0xc0] sm:$0xff]  ;;  %v1928_v26 = vld [vmem:[#allocation4 + $0xb0] sm:$0xff] }
 0x1fa   :  { %v775_v34 = vpop.xlane.xlu1 %774  ;;  %1656 = vst.msk [vmem:[#allocation3 + $0xb0] sm:$0xff] %vm25_vm3, %v1631_v49  ;;  %v1756_v37 = vld [vmem:[#allocation2 + $0x98] sm:$0xff]  ;;  %v1843_v2 = vld [vmem:[#allocation3 + $0xa0] sm:$0xff]  ;;  %v1974_v21 = vsel %vm25_vm3, %v1928_v26, 0.0 }
 0x1fb   :  { %1580 = vst.msk [vmem:[#allocation2 + $0xa8] sm:$0xff] %vm25_vm3, %v1554_v10  ;;  %v929_v4 = vsub.f32 %v775_v34, %v904_v56  ;;  %v1504_v3 = vpop.xlane.xlu0 %1503  ;;  %v1799_v12 = vsel %vm25_vm3, %v1756_v37, 0.0  ;;  %v1885_v56 = vsel %vm25_vm3, %v1842_v38, 0.0  ;;  %v1887_v18 = vsel %vm25_vm3, %v1843_v2, 0.0 }
 0x1fc   :  { %v1632_v41 = vadd.f32 %v1607_v39, %v1504_v3  ;;  %v1800_v30 = vadd.f32 %v1799_v12, %v1798_v17  ;;  %v1886_v39 = vadd.f32 %v1885_v56, %v1884_v0  ;;  %v1975_v63 = vadd.f32 %v1974_v21, %v1973_v54 }
 0x1fd   :  { %v1555_v55 = vadd.f32 %v1530_v45, %v929_v4  ;;  %v1844_v58 = vld [vmem:[#allocation3 + $0xa8] sm:$0xff] }
 0x1fe   :  { %v778_v27 = vpop.xlane.xlu1 %777  ;;  %1657 = vst.msk [vmem:[#allocation3 + $0xb8] sm:$0xff] %vm25_vm3, %v1632_v41  ;;  %v1757_v16 = vld [vmem:[#allocation2 + $0xa0] sm:$0xff]  ;;  %v1889_v4 = vsel %vm25_vm3, %v1844_v58, 0.0  ;;  %v1888_v3 = vadd.f32 %v1887_v18, %v1886_v39  ;;  %v1977_v5 = vadd.f32 %v1976_v61, %v1975_v63 }
 0x1ff   :  { %1581 = vst.msk [vmem:[#allocation2 + $0xb0] sm:$0xff] %vm25_vm3, %v1555_v55  ;;  %v930_v6 = vsub.f32 %v778_v27, %v905_v36  ;;  %v1801_v20 = vsel %vm25_vm3, %v1757_v16, 0.0  ;;  %v1930_v55 = vld [vmem:[#allocation4 + $0xc0] sm:$0xff] }
 0x200   :  { %v1802_v34 = vadd.f32 %v1801_v20, %v1800_v30  ;;  %v1890_v9 = vadd.f32 %v1889_v4, %v1888_v3  ;;  %v1978_v42 = vsel %vm25_vm3, %v1930_v55, 0.0 }
 0x201   :  { %v1556_v23 = vadd.f32 %v1531_v33, %v930_v6  ;;  %v1845_v45 = vld [vmem:[#allocation3 + $0xb0] sm:$0xff]  ;;  %v1979_v37 = vadd.f32 %v1978_v42, %v1977_v5 }
 0x202   :  { %v781_v50 = vpop.xlane.xlu1 %780  ;;  %v1758_v48 = vld [vmem:[#allocation2 + $0xa8] sm:$0xff]  ;;  %v1891_v22 = vsel %vm25_vm3, %v1845_v45, 0.0 }
 0x203   :  { %1582 = vst.msk [vmem:[#allocation2 + $0xb8] sm:$0xff] %vm25_vm3, %v1556_v23  ;;  %v931_v25 = vsub.f32 %v781_v50, %v906_v57  ;;  %v1803_v49 = vsel %vm25_vm3, %v1758_v48, 0.0  ;;  %v1892_v33 = vadd.f32 %v1891_v22, %v1890_v9 }
 0x204   :  { %v1804_v7 = vadd.f32 %v1803_v49, %v1802_v34 }
 0x205   :  { %v1557_v8 = vadd.f32 %v1532_v62, %v931_v25  ;;  %v1846_v40 = vld [vmem:[#allocation3 + $0xb8] sm:$0xff] }
 0x206   :  { %v1507_v19 = vpop.xlane.xlu1 %1506  ;;  %v1759_v59 = vld [vmem:[#allocation2 + $0xb0] sm:$0xff]  ;;  %v1893_v41 = vsel %vm25_vm3, %v1846_v40, 0.0 }
 0x207   :  { %1583 = vst.msk [vmem:[#allocation2 + $0xc0] sm:$0xff] %vm25_vm3, %v1557_v8  ;;  %v1633_v10 = vadd.f32 %v1608_v35, %v1507_v19  ;;  %v1805_v14 = vsel %vm25_vm3, %v1759_v59, 0.0  ;;  %v1894_v52 = vadd.f32 %v1893_v41, %v1892_v33 }
 0x208   :  { %v1806_v28 = vadd.f32 %v1805_v14, %v1804_v7 }
 0x209   :  { %1658 = vst.msk [vmem:[#allocation3 + $0xc0] sm:$0xff] %vm25_vm3, %v1633_v10 }
 0x20a   :  { %v1760_v32 = vld [vmem:[#allocation2 + $0xb8] sm:$0xff] }
 0x20b   :  { %v1807_v1 = vsel %vm25_vm3, %v1760_v32, 0.0 }
 0x20c   :  { %v1808_v27 = vadd.f32 %v1807_v1, %v1806_v28 }
 0x20e   :  { %v1761_v36 = vld [vmem:[#allocation2 + $0xc0] sm:$0xff] }
 0x20f   :  { %v1809_v31 = vsel %vm25_vm3, %v1761_v36, 0.0 }
 0x210   :  { %v1810_v29 = vadd.f32 %v1809_v31, %v1808_v27  ;;  %v1847_v6 = vld [vmem:[#allocation3 + $0xc0] sm:$0xff] }
 0x211   :  { %v1895_v43 = vsel %vm25_vm3, %v1847_v6, 0.0 }
 0x212   :  { %1811 = vadd.xlane.f32.xlu0 %v1810_v29  ;;  %v1896_v51 = vadd.f32 %v1895_v43, %v1894_v52 }
 0x214   :  { %1897 = vadd.xlane.f32.xlu1 %v1896_v51 }
 0x216   :  { %1980 = vadd.xlane.f32.xlu0 %v1979_v37 }
 0x29f   :  { %v1812_v60 = vpop.xlane.xlu0 %1811 }
 0x2a0   :  { %v1813_v24 = vrot.slane %v1812_v60, 4 }
 0x2a1   :  { %v1898_v46 = vpop.xlane.xlu1 %1897 }
 0x2a2   :  { %v1814_v23 = vadd.f32 %v1813_v24, %v1812_v60  ;;  %v1899_v57 = vrot.slane %v1898_v46, 4 }
 0x2a3   :  { %v1981_v13 = vpop.xlane.xlu0 %1980 }
 0x2a4   :  { %v1815_v11 = vrot.slane %v1814_v23, 2  ;;  %v1900_v50 = vadd.f32 %v1899_v57, %v1898_v46  ;;  %v1982_v62 = vrot.slane %v1981_v13, 4 }
 0x2a6   :  { %v1901_v16 = vrot.slane %v1900_v50, 2  ;;  %v1983_v47 = vadd.f32 %v1982_v62, %v1981_v13  ;;  %v1816_v38 = vadd.f32 %v1815_v11, %v1814_v23 }
 0x2a8   :  { %v1902_v53 = vadd.f32 %v1901_v16, %v1900_v50  ;;  %v1984_v25 = vrot.slane %v1983_v47, 2  ;;  %v1817_v35 = vrot.slane %v1816_v38, 1 }
 0x2aa   :  { %v1985_v12 = vadd.f32 %v1984_v25, %v1983_v47  ;;  %v1818_v44 = vadd.f32 %v1817_v35, %v1816_v38  ;;  %v1903_v48 = vrot.slane %v1902_v53, 1 }
 0x2ac   :  { %2095 = vpush %v1818_v44  ;;  %v1904_v17 = vadd.f32 %v1903_v48, %v1902_v53  ;;  %v1986_v2 = vrot.slane %v1985_v12, 1 }
 0x2ae   :  { %2097 = vpush %v1904_v17  ;;  %v1987_v0 = vadd.f32 %v1986_v2, %v1985_v12 }
 0x2b0   :  { %2099 = vpush %v1987_v0 }
 0x2dd   :  { %s2096_s1 = spop %2095 }
 0x2de   :  { %s1820_s15 = smul.f32 -0.005, %s2096_s1 }
 0x2df   :  { %s2098_s16 = spop %2097 }
 0x2e0   :  { %1822 = sst [smem:[#allocation5]] %s1820_s15 }
 0x2e1   :  { %s2100_s17 = spop %2099 }
 0x2e2   :  { %v1989_v26 = vstv %s2100_s17 }
 0x2e3   :  { %2306 = shalt.err (!%p2303_p2)
}
 0x2e4   :  { %s2323_s25 = smov [#allocation5]   ;;  %2269 = vrcp.f32 %v1989_v26  ;;  %s2307_s30 = scalar_lea.hbm %s3969_s5, 16 }
 0x2e5   :  { %2002 = dma.smem_to_hbm %s2323_s25, 16, %s3968_s4, [#allocation6]  }
 0x2e6   :  { %p2308_p3 = scmp.ne.s32.totalorder %s3969_s5, %s2307_s30  ;;  %p2311_p4 = scmp.lt.u32.totalorder %s2307_s30, %s3969_s5 }
 0x2e8   :  { %p2313_p5 = pnand %p2311_p4, %p2308_p3 }
 0x2ee   :  { %v2270_v8 = vpop.eup %2269 }
 0x2ef   :  { %2101 = vpush %v2270_v8 }
 0x320   :  { %s2102_s3 = spop %2101 }
 0x321   :  { %s1992_s27 = smul.f32 %s2102_s3, %s2098_s16 }
 0x323   :  { %1994 = sst [smem:[#allocation7]] %s1992_s27 }
 0x324   :  { %2316 = shalt.err (!%p2313_p5)
}
 0x325   :  { %s2324_s4 = smov [#allocation7]  }
 0x326   :  { %2010 = dma.smem_to_hbm %s2324_s4, 16, %s3969_s5, [#allocation8]  }
 0x327   :  { %2317 = dma.done.wait [#allocation6], 16  }
 0x328   :  { %2318 = vsyncadd [#allocation6], 4294967280 }
 0x329   :  { %2319 = dma.done.wait [#allocation8], 16  }
 0x32a   :  { %2320 = vsyncadd [#allocation8], 4294967280 }
 0x32b   :  { %2017 = sfence }
 0x32c   :  { %2018 = vsyncpa [#allocation6], 1 }
 0x32d   :  { %2019 = vsyncpa [#allocation8], 1 }

</bundles_post_ra>
